<compile_context>
chip_gen: v7x
topology: tpu7x:2x2x1
jax: 0.10.0
libtpu: 0.0.40
codegen_flags: <defaults>
</compile_context>

<pallas_src>
import jax
import jax.numpy as jnp
from jax.experimental import pallas as pl
from jax.experimental.pallas import tpu as pltpu

_LANE = 128  # lane-padded channel width used inside the kernel


# ----------------------------------------------------------------------------
# Fused Pallas kernel: one batch element per grid step
# ----------------------------------------------------------------------------
def _encoder_block_kernel(ph_ref, w1_ref, b1_ref, w2_ref, b2_ref,
                          w3_ref, b3_ref, o_ref, y_pad, t_pad):
    Hp2, Wp2, Cp = y_pad.shape
    Ho, Wo = Hp2 - 2, Wp2 - 2
    M = Ho * Wo
    Kp = ph_ref.shape[-1]          # 4 * Cin (phase-grouped contraction width)

    # Halo scratch: zero it every step (cheap) so the 1-pixel 'same' borders
    # are 0 no matter which core / grid step runs (megacore-safe).
    y_pad[...] = jnp.zeros_like(y_pad)
    t_pad[...] = jnp.zeros_like(t_pad)

    # ---- c1: Conv2d(k=4, s=2, p=1) + ReLU — in-kernel im2col ---------------
    # The wrapper split the padded input into the 4 stride-2 phases, so the
    # 16 taps become 4 phase-grouped matmuls (K = 4*Cin each); no patches
    # matrix is ever materialized in HBM.
    acc = jnp.zeros((M, Cp), jnp.float32)
    for a in range(2):
        for b in range(2):
            patch = ph_ref[:, a:a + Ho, b:b + Wo, :].reshape(M, Kp)
            acc = acc + jnp.dot(patch, w1_ref[2 * a + b],
                                preferred_element_type=jnp.float32)
    y = jnp.maximum(acc + b1_ref[...], 0.0)
    y_pad[1:1 + Ho, 1:1 + Wo, :] = y.reshape(Ho, Wo, Cp)

    # ---- c2: Conv2d(3x3, 'same') + ReLU (y read from VMEM halo scratch) ----
    acc = jnp.zeros((M, Cp), jnp.float32)
    for kh in range(3):
        for kw in range(3):
            patch = y_pad[kh:kh + Ho, kw:kw + Wo, :].reshape(M, Cp)
            acc = acc + jnp.dot(patch.astype(jnp.bfloat16),
                                w2_ref[3 * kh + kw],
                                preferred_element_type=jnp.float32)
    t = jnp.maximum(acc + b2_ref[...], 0.0)
    t_pad[1:1 + Ho, 1:1 + Wo, :] = t.reshape(Ho, Wo, Cp)

    # ---- c3: Conv2d(3x3, 'same') + residual (from scratch) + ReLU ----------
    acc = jnp.zeros((M, Cp), jnp.float32)
    for kh in range(3):
        for kw in range(3):
            patch = t_pad[kh:kh + Ho, kw:kw + Wo, :].reshape(M, Cp)
            acc = acc + jnp.dot(patch.astype(jnp.bfloat16),
                                w3_ref[3 * kh + kw],
                                preferred_element_type=jnp.float32)
    y_res = y_pad[1:1 + Ho, 1:1 + Wo, :].reshape(M, Cp)
    out = jnp.maximum(acc + b3_ref[...] + y_res, 0.0)
    o_ref[...] = out.reshape(1, M, Cp).astype(o_ref.dtype)


# ----------------------------------------------------------------------------
# One-time weight / bias repacking (layout plumbing, outside the kernel)
# ----------------------------------------------------------------------------
def _prep_conv1_weight(w1, cp):
    """(Cout, Cin, 4, 4) -> (4, 4*Cin, Cp) phase-grouped bf16 blocks."""
    cout, cin = w1.shape[0], w1.shape[1]
    w = jnp.transpose(w1, (2, 3, 1, 0))            # (kh, kw, Cin, Cout)
    w = w.reshape(2, 2, 2, 2, cin, cout)           # (a, r, b, s, Cin, Cout)
    w = jnp.transpose(w, (0, 2, 1, 3, 4, 5))       # (a, b, r, s, Cin, Cout)
    w = w.reshape(4, 4 * cin, cout)                # [2a+b, (2r+s)*Cin+c, o]
    return jnp.pad(w, ((0, 0), (0, 0), (0, cp - cout))).astype(jnp.bfloat16)


def _prep_conv3_weight(w, cp):
    """(Cout, Cin, 3, 3) -> (9, Cp, Cp) tap-major bf16 blocks."""
    cout, cin = w.shape[0], w.shape[1]
    wt = jnp.transpose(w, (2, 3, 1, 0)).reshape(9, cin, cout)
    return jnp.pad(wt, ((0, 0), (0, cp - cin), (0, cp - cout))
                   ).astype(jnp.bfloat16)


def _prep_bias(b, cp):
    return jnp.pad(b.astype(jnp.float32), (0, cp - b.shape[0])).reshape(1, cp)


# ----------------------------------------------------------------------------
# EncoderBlock forward (NCHW in / NCHW out, like the PyTorch module)
# ----------------------------------------------------------------------------
def encoder_block_forward(x_nchw, params):
    w1, b1, w2, b2, w3, b3 = params   # PyTorch layouts: (O, I, kh, kw), (O,)
    N, Cin, H, W = x_nchw.shape
    Cout = w1.shape[0]
    assert H % 2 == 0 and W % 2 == 0, "k=4,s=2,p=1 halving needs even H, W"
    Ho, Wo = H // 2, W // 2
    Cp = _LANE

    w1_blk = _prep_conv1_weight(w1, Cp)
    w2_blk = _prep_conv3_weight(w2, Cp)
    w3_blk = _prep_conv3_weight(w3, Cp)
    b1p, b2p, b3p = (_prep_bias(bb, Cp) for bb in (b1, b2, b3))

    # NCHW -> NHWC, pad by 1, space-to-depth into the 4 stride-2 phases:
    #   ph[n, m, l, (2r+s)*Cin + c] = x_padded[n, 2m+r, 2l+s, c]
    x = jnp.transpose(x_nchw, (0, 2, 3, 1)).astype(jnp.float32)
    xp = jnp.pad(x, ((0, 0), (1, 1), (1, 1), (0, 0)))
    ph = xp.reshape(N, Ho + 1, 2, Wo + 1, 2, Cin)
    ph = jnp.transpose(ph, (0, 1, 3, 2, 4, 5)).reshape(N, Ho + 1, Wo + 1,
                                                       4 * Cin)
    ph = ph.astype(jnp.bfloat16)

    out_flat = pl.pallas_call(
        _encoder_block_kernel,
        out_shape=jax.ShapeDtypeStruct((N, Ho * Wo, Cp), jnp.float32),
        grid=(N,),
        in_specs=[
            pl.BlockSpec((1, Ho + 1, Wo + 1, 4 * Cin),
                         lambda n: (n, 0, 0, 0)),          # input phases
            pl.BlockSpec((4, 4 * Cin, Cp), lambda n: (0, 0, 0)),   # w1
            pl.BlockSpec((1, Cp), lambda n: (0, 0)),               # b1
            pl.BlockSpec((9, Cp, Cp), lambda n: (0, 0, 0)),        # w2
            pl.BlockSpec((1, Cp), lambda n: (0, 0)),               # b2
            pl.BlockSpec((9, Cp, Cp), lambda n: (0, 0, 0)),        # w3
            pl.BlockSpec((1, Cp), lambda n: (0, 0)),               # b3
        ],
        out_specs=pl.BlockSpec((1, Ho * Wo, Cp), lambda n: (n, 0, 0)),
        scratch_shapes=[
            pltpu.VMEM((Ho + 2, Wo + 2, Cp), jnp.float32),  # y (post-c1) halo
            pltpu.VMEM((Ho + 2, Wo + 2, Cp), jnp.float32),  # t (post-c2) halo
        ],
        compiler_params=pltpu.CompilerParams(
            dimension_semantics=("parallel",),     # pipelining + v7x megacore
            vmem_limit_bytes=32 * 1024 * 1024,
        ),
    )(ph, w1_blk, b1p, w2_blk, b2p, w3_blk, b3p)

    out = out_flat[:, :, :Cout].reshape(N, Ho, Wo, Cout)
    return jnp.transpose(out, (0, 3, 1, 2))        # back to NCHW


# ----------------------------------------------------------------------------
# Pure-JAX reference (PyTorch semantics, NCHW) for verification
# ----------------------------------------------------------------------------
def _torch_conv2d(x, w, b, stride, pad):
    out = jax.lax.conv_general_dilated(
        x, w, window_strides=(stride, stride),
        padding=[(pad, pad), (pad, pad)],
        dimension_numbers=("NCHW", "OIHW", "NCHW"),
        precision=jax.lax.Precision.HIGHEST)
    return out + b[None, :, None, None]


def reference_forward(x, params):
    w1, b1, w2, b2, w3, b3 = params
    y = jax.nn.relu(_torch_conv2d(x, w1, b1, 2, 1))
    t = jax.nn.relu(_torch_conv2d(y, w2, b2, 1, 1))
    t = _torch_conv2d(t, w3, b3, 1, 1)
    return jax.nn.relu(y + t)


# ----------------------------------------------------------------------------
if __name__ == "__main__":
    N, Cin, Cout, H, W = 2, 4, 8, 16, 16
    key = jax.random.PRNGKey(0)
    ks = jax.random.split(key, 7)

    x = jax.random.normal(ks[0], (N, Cin, H, W), jnp.float32)
    w1 = jax.random.normal(ks[1], (Cout, Cin, 4, 4), jnp.float32) * 0.1
    b1 = jax.random.normal(ks[2], (Cout,), jnp.float32) * 0.1
    w2 = jax.random.normal(ks[3], (Cout, Cout, 3, 3), jnp.float32) * 0.1
    b2 = jax.random.normal(ks[4], (Cout,), jnp.float32) * 0.1
    w3 = jax.random.normal(ks[5], (Cout, Cout, 3, 3), jnp.float32) * 0.1
    b3 = jax.random.normal(ks[6], (Cout,), jnp.float32) * 0.1
    params = (w1, b1, w2, b2, w3, b3)

    out = jax.jit(encoder_block_forward)(x, params)
    out = jax.block_until_ready(out)

    ref = reference_forward(x, params)
    assert out.shape == (N, Cout, H // 2, W // 2), out.shape
    max_err = float(jnp.max(jnp.abs(out - ref)))
    if not bool(jnp.allclose(out, ref, rtol=2e-2, atol=2e-2)):
        raise AssertionError(f"kernel/reference mismatch, max abs err={max_err}")

    print("KERNEL_OK")
</pallas_src>

<mosaic_0001>
module attributes {stable_mosaic.version = 11 : i64} {
  func.func @_encoder_block_kernel(%arg0: i32, %arg1: memref<1x9x9x16xbf16, #tpu.memory_space<vmem>>, %arg2: memref<4x16x128xbf16, #tpu.memory_space<vmem>>, %arg3: memref<1x128xf32, #tpu.memory_space<vmem>>, %arg4: memref<9x128x128xbf16, #tpu.memory_space<vmem>>, %arg5: memref<1x128xf32, #tpu.memory_space<vmem>>, %arg6: memref<9x128x128xbf16, #tpu.memory_space<vmem>>, %arg7: memref<1x128xf32, #tpu.memory_space<vmem>>, %arg8: memref<1x64x128xf32, #tpu.memory_space<vmem>>, %arg9: memref<10x10x128xf32, #tpu.memory_space<vmem>>, %arg10: memref<10x10x128xf32, #tpu.memory_space<vmem>>) attributes {dimension_semantics = [#tpu.dimension_semantics<parallel>], iteration_bounds = array<i64: 2>, scalar_prefetch = 0 : i64, scratch_operands = 2 : i64, tpu.core_type = #tpu.core_type<tc>, window_params = [{transform_indices = @transform_0, window_bounds = array<i64: 1, 9, 9, 16>}, {pipeline_mode = #tpu.pipeline_mode<synchronous>, transform_indices = @transform_1, window_bounds = array<i64: 4, 16, 128>}, {pipeline_mode = #tpu.pipeline_mode<synchronous>, transform_indices = @transform_2, window_bounds = array<i64: 1, 128>}, {pipeline_mode = #tpu.pipeline_mode<synchronous>, transform_indices = @transform_3, window_bounds = array<i64: 9, 128, 128>}, {pipeline_mode = #tpu.pipeline_mode<synchronous>, transform_indices = @transform_4, window_bounds = array<i64: 1, 128>}, {pipeline_mode = #tpu.pipeline_mode<synchronous>, transform_indices = @transform_5, window_bounds = array<i64: 9, 128, 128>}, {pipeline_mode = #tpu.pipeline_mode<synchronous>, transform_indices = @transform_6, window_bounds = array<i64: 1, 128>}, {transform_indices = @transform_7, window_bounds = array<i64: 1, 64, 128>}]} {
    %cst = arith.constant 0.000000e+00 : f32
    %0 = vector.broadcast %cst : f32 to vector<10x10x128xf32>
    %c0 = arith.constant 0 : index
    %c0_0 = arith.constant 0 : index
    %c0_1 = arith.constant 0 : index
    %1 = vector.load %arg9[%c0, %c0_0, %c0_1] : memref<10x10x128xf32, #tpu.memory_space<vmem>>, vector<10x10x128xf32>
    tpu.vector_store %arg9[%c0, %c0_0, %c0_1], %0 {strides = array<i32>} : memref<10x10x128xf32, #tpu.memory_space<vmem>>, vector<10x10x128xf32>,
    %cst_2 = arith.constant 0.000000e+00 : f32
    %2 = vector.broadcast %cst_2 : f32 to vector<10x10x128xf32>
    %c0_3 = arith.constant 0 : index
    %c0_4 = arith.constant 0 : index
    %c0_5 = arith.constant 0 : index
    %3 = vector.load %arg10[%c0_3, %c0_4, %c0_5] : memref<10x10x128xf32, #tpu.memory_space<vmem>>, vector<10x10x128xf32>
    tpu.vector_store %arg10[%c0_3, %c0_4, %c0_5], %2 {strides = array<i32>} : memref<10x10x128xf32, #tpu.memory_space<vmem>>, vector<10x10x128xf32>,
    %cst_6 = arith.constant 0.000000e+00 : f32
    %4 = vector.broadcast %cst_6 : f32 to vector<64x128xf32>
    %c0_7 = arith.constant 0 : index
    %c0_8 = arith.constant 0 : index
    %c0_9 = arith.constant 0 : index
    %c0_10 = arith.constant 0 : index
    %5 = vector.load %arg1[%c0_7, %c0_8, %c0_9, %c0_10] : memref<1x9x9x16xbf16, #tpu.memory_space<vmem>>, vector<1x8x8x16xbf16>
    %6 = vector.shape_cast %5 : vector<1x8x8x16xbf16> to vector<64x16xbf16>
    %c0_11 = arith.constant 0 : index
    %c0_12 = arith.constant 0 : index
    %c0_13 = arith.constant 0 : index
    %7 = vector.load %arg2[%c0_11, %c0_12, %c0_13] : memref<4x16x128xbf16, #tpu.memory_space<vmem>>, vector<1x16x128xbf16>
    %8 = vector.shape_cast %7 : vector<1x16x128xbf16> to vector<16x128xbf16>
    %cst_14 = arith.constant dense<0.000000e+00> : vector<64x128xf32>
    %9 = tpu.matmul %6, %8, %cst_14 {dimension_numbers = #tpu.dot_dimension_numbers<[1], [0], [0], [1], [0, 0, 1, 1], [], []>} : vector<64x16xbf16>, vector<16x128xbf16>, vector<64x128xf32> -> vector<64x128xf32>
    %10 = arith.addf %4, %9 : vector<64x128xf32>
    %c0_15 = arith.constant 0 : index
    %c0_16 = arith.constant 0 : index
    %c1 = arith.constant 1 : index
    %c0_17 = arith.constant 0 : index
    %11 = vector.load %arg1[%c0_15, %c0_16, %c1, %c0_17] : memref<1x9x9x16xbf16, #tpu.memory_space<vmem>>, vector<1x8x8x16xbf16>
    %12 = vector.shape_cast %11 : vector<1x8x8x16xbf16> to vector<64x16xbf16>
    %c1_18 = arith.constant 1 : index
    %c0_19 = arith.constant 0 : index
    %c0_20 = arith.constant 0 : index
    %13 = vector.load %arg2[%c1_18, %c0_19, %c0_20] : memref<4x16x128xbf16, #tpu.memory_space<vmem>>, vector<1x16x128xbf16>
    %14 = vector.shape_cast %13 : vector<1x16x128xbf16> to vector<16x128xbf16>
    %cst_21 = arith.constant dense<0.000000e+00> : vector<64x128xf32>
    %15 = tpu.matmul %12, %14, %cst_21 {dimension_numbers = #tpu.dot_dimension_numbers<[1], [0], [0], [1], [0, 0, 1, 1], [], []>} : vector<64x16xbf16>, vector<16x128xbf16>, vector<64x128xf32> -> vector<64x128xf32>
    %16 = arith.addf %10, %15 : vector<64x128xf32>
    %c0_22 = arith.constant 0 : index
    %c1_23 = arith.constant 1 : index
    %c0_24 = arith.constant 0 : index
    %c0_25 = arith.constant 0 : index
    %17 = vector.load %arg1[%c0_22, %c1_23, %c0_24, %c0_25] : memref<1x9x9x16xbf16, #tpu.memory_space<vmem>>, vector<1x8x8x16xbf16>
    %18 = vector.shape_cast %17 : vector<1x8x8x16xbf16> to vector<64x16xbf16>
    %c2 = arith.constant 2 : index
    %c0_26 = arith.constant 0 : index
    %c0_27 = arith.constant 0 : index
    %19 = vector.load %arg2[%c2, %c0_26, %c0_27] : memref<4x16x128xbf16, #tpu.memory_space<vmem>>, vector<1x16x128xbf16>
    %20 = vector.shape_cast %19 : vector<1x16x128xbf16> to vector<16x128xbf16>
    %cst_28 = arith.constant dense<0.000000e+00> : vector<64x128xf32>
    %21 = tpu.matmul %18, %20, %cst_28 {dimension_numbers = #tpu.dot_dimension_numbers<[1], [0], [0], [1], [0, 0, 1, 1], [], []>} : vector<64x16xbf16>, vector<16x128xbf16>, vector<64x128xf32> -> vector<64x128xf32>
    %22 = arith.addf %16, %21 : vector<64x128xf32>
    %c0_29 = arith.constant 0 : index
    %c1_30 = arith.constant 1 : index
    %c1_31 = arith.constant 1 : index
    %c0_32 = arith.constant 0 : index
    %23 = vector.load %arg1[%c0_29, %c1_30, %c1_31, %c0_32] : memref<1x9x9x16xbf16, #tpu.memory_space<vmem>>, vector<1x8x8x16xbf16>
    %24 = vector.shape_cast %23 : vector<1x8x8x16xbf16> to vector<64x16xbf16>
    %c3 = arith.constant 3 : index
    %c0_33 = arith.constant 0 : index
    %c0_34 = arith.constant 0 : index
    %25 = vector.load %arg2[%c3, %c0_33, %c0_34] : memref<4x16x128xbf16, #tpu.memory_space<vmem>>, vector<1x16x128xbf16>
    %26 = vector.shape_cast %25 : vector<1x16x128xbf16> to vector<16x128xbf16>
    %cst_35 = arith.constant dense<0.000000e+00> : vector<64x128xf32>
    %27 = tpu.matmul %24, %26, %cst_35 {dimension_numbers = #tpu.dot_dimension_numbers<[1], [0], [0], [1], [0, 0, 1, 1], [], []>} : vector<64x16xbf16>, vector<16x128xbf16>, vector<64x128xf32> -> vector<64x128xf32>
    %28 = arith.addf %22, %27 : vector<64x128xf32>
    %c0_36 = arith.constant 0 : index
    %c0_37 = arith.constant 0 : index
    %29 = vector.load %arg3[%c0_36, %c0_37] : memref<1x128xf32, #tpu.memory_space<vmem>>, vector<1x128xf32>
    %30 = vector.broadcast %29 : vector<1x128xf32> to vector<64x128xf32>
    %31 = arith.addf %28, %30 : vector<64x128xf32>
    %cst_38 = arith.constant 0.000000e+00 : f32
    %32 = vector.broadcast %cst_38 : f32 to vector<64x128xf32>
    %33 = arith.maximumf %31, %32 : vector<64x128xf32>
    %34 = vector.shape_cast %33 : vector<64x128xf32> to vector<8x8x128xf32>
    %c1_39 = arith.constant 1 : index
    %c1_40 = arith.constant 1 : index
    %c0_41 = arith.constant 0 : index
    %35 = vector.load %arg9[%c1_39, %c1_40, %c0_41] : memref<10x10x128xf32, #tpu.memory_space<vmem>>, vector<8x8x128xf32>
    tpu.vector_store %arg9[%c1_39, %c1_40, %c0_41], %34 {strides = array<i32>} : memref<10x10x128xf32, #tpu.memory_space<vmem>>, vector<8x8x128xf32>,
    %cst_42 = arith.constant 0.000000e+00 : f32
    %36 = vector.broadcast %cst_42 : f32 to vector<64x128xf32>
    %c0_43 = arith.constant 0 : index
    %c0_44 = arith.constant 0 : index
    %c0_45 = arith.constant 0 : index
    %37 = vector.load %arg9[%c0_43, %c0_44, %c0_45] : memref<10x10x128xf32, #tpu.memory_space<vmem>>, vector<8x8x128xf32>
    %38 = vector.shape_cast %37 : vector<8x8x128xf32> to vector<64x128xf32>
    %39 = arith.truncf %38 : vector<64x128xf32> to vector<64x128xbf16>
    %c0_46 = arith.constant 0 : index
    %c0_47 = arith.constant 0 : index
    %c0_48 = arith.constant 0 : index
    %40 = vector.load %arg4[%c0_46, %c0_47, %c0_48] : memref<9x128x128xbf16, #tpu.memory_space<vmem>>, vector<1x128x128xbf16>
    %41 = vector.shape_cast %40 : vector<1x128x128xbf16> to vector<128x128xbf16>
    %cst_49 = arith.constant dense<0.000000e+00> : vector<64x128xf32>
    %42 = tpu.matmul %39, %41, %cst_49 {dimension_numbers = #tpu.dot_dimension_numbers<[1], [0], [0], [1], [0, 0, 1, 1], [], []>} : vector<64x128xbf16>, vector<128x128xbf16>, vector<64x128xf32> -> vector<64x128xf32>
    %43 = arith.addf %36, %42 : vector<64x128xf32>
    %c0_50 = arith.constant 0 : index
    %c1_51 = arith.constant 1 : index
    %c0_52 = arith.constant 0 : index
    %44 = vector.load %arg9[%c0_50, %c1_51, %c0_52] : memref<10x10x128xf32, #tpu.memory_space<vmem>>, vector<8x8x128xf32>
    %45 = vector.shape_cast %44 : vector<8x8x128xf32> to vector<64x128xf32>
    %46 = arith.truncf %45 : vector<64x128xf32> to vector<64x128xbf16>
    %c1_53 = arith.constant 1 : index
    %c0_54 = arith.constant 0 : index
    %c0_55 = arith.constant 0 : index
    %47 = vector.load %arg4[%c1_53, %c0_54, %c0_55] : memref<9x128x128xbf16, #tpu.memory_space<vmem>>, vector<1x128x128xbf16>
    %48 = vector.shape_cast %47 : vector<1x128x128xbf16> to vector<128x128xbf16>
    %cst_56 = arith.constant dense<0.000000e+00> : vector<64x128xf32>
    %49 = tpu.matmul %46, %48, %cst_56 {dimension_numbers = #tpu.dot_dimension_numbers<[1], [0], [0], [1], [0, 0, 1, 1], [], []>} : vector<64x128xbf16>, vector<128x128xbf16>, vector<64x128xf32> -> vector<64x128xf32>
    %50 = arith.addf %43, %49 : vector<64x128xf32>
    %c0_57 = arith.constant 0 : index
    %c2_58 = arith.constant 2 : index
    %c0_59 = arith.constant 0 : index
    %51 = vector.load %arg9[%c0_57, %c2_58, %c0_59] : memref<10x10x128xf32, #tpu.memory_space<vmem>>, vector<8x8x128xf32>
    %52 = vector.shape_cast %51 : vector<8x8x128xf32> to vector<64x128xf32>
    %53 = arith.truncf %52 : vector<64x128xf32> to vector<64x128xbf16>
    %c2_60 = arith.constant 2 : index
    %c0_61 = arith.constant 0 : index
    %c0_62 = arith.constant 0 : index
    %54 = vector.load %arg4[%c2_60, %c0_61, %c0_62] : memref<9x128x128xbf16, #tpu.memory_space<vmem>>, vector<1x128x128xbf16>
    %55 = vector.shape_cast %54 : vector<1x128x128xbf16> to vector<128x128xbf16>
    %cst_63 = arith.constant dense<0.000000e+00> : vector<64x128xf32>
    %56 = tpu.matmul %53, %55, %cst_63 {dimension_numbers = #tpu.dot_dimension_numbers<[1], [0], [0], [1], [0, 0, 1, 1], [], []>} : vector<64x128xbf16>, vector<128x128xbf16>, vector<64x128xf32> -> vector<64x128xf32>
    %57 = arith.addf %50, %56 : vector<64x128xf32>
    %c1_64 = arith.constant 1 : index
    %c0_65 = arith.constant 0 : index
    %c0_66 = arith.constant 0 : index
    %58 = vector.load %arg9[%c1_64, %c0_65, %c0_66] : memref<10x10x128xf32, #tpu.memory_space<vmem>>, vector<8x8x128xf32>
    %59 = vector.shape_cast %58 : vector<8x8x128xf32> to vector<64x128xf32>
    %60 = arith.truncf %59 : vector<64x128xf32> to vector<64x128xbf16>
    %c3_67 = arith.constant 3 : index
    %c0_68 = arith.constant 0 : index
    %c0_69 = arith.constant 0 : index
    %61 = vector.load %arg4[%c3_67, %c0_68, %c0_69] : memref<9x128x128xbf16, #tpu.memory_space<vmem>>, vector<1x128x128xbf16>
    %62 = vector.shape_cast %61 : vector<1x128x128xbf16> to vector<128x128xbf16>
    %cst_70 = arith.constant dense<0.000000e+00> : vector<64x128xf32>
    %63 = tpu.matmul %60, %62, %cst_70 {dimension_numbers = #tpu.dot_dimension_numbers<[1], [0], [0], [1], [0, 0, 1, 1], [], []>} : vector<64x128xbf16>, vector<128x128xbf16>, vector<64x128xf32> -> vector<64x128xf32>
    %64 = arith.addf %57, %63 : vector<64x128xf32>
    %c1_71 = arith.constant 1 : index
    %c1_72 = arith.constant 1 : index
    %c0_73 = arith.constant 0 : index
    %65 = vector.load %arg9[%c1_71, %c1_72, %c0_73] : memref<10x10x128xf32, #tpu.memory_space<vmem>>, vector<8x8x128xf32>
    %66 = vector.shape_cast %65 : vector<8x8x128xf32> to vector<64x128xf32>
    %67 = arith.truncf %66 : vector<64x128xf32> to vector<64x128xbf16>
    %c4 = arith.constant 4 : index
    %c0_74 = arith.constant 0 : index
    %c0_75 = arith.constant 0 : index
    %68 = vector.load %arg4[%c4, %c0_74, %c0_75] : memref<9x128x128xbf16, #tpu.memory_space<vmem>>, vector<1x128x128xbf16>
    %69 = vector.shape_cast %68 : vector<1x128x128xbf16> to vector<128x128xbf16>
    %cst_76 = arith.constant dense<0.000000e+00> : vector<64x128xf32>
    %70 = tpu.matmul %67, %69, %cst_76 {dimension_numbers = #tpu.dot_dimension_numbers<[1], [0], [0], [1], [0, 0, 1, 1], [], []>} : vector<64x128xbf16>, vector<128x128xbf16>, vector<64x128xf32> -> vector<64x128xf32>
    %71 = arith.addf %64, %70 : vector<64x128xf32>
    %c1_77 = arith.constant 1 : index
    %c2_78 = arith.constant 2 : index
    %c0_79 = arith.constant 0 : index
    %72 = vector.load %arg9[%c1_77, %c2_78, %c0_79] : memref<10x10x128xf32, #tpu.memory_space<vmem>>, vector<8x8x128xf32>
    %73 = vector.shape_cast %72 : vector<8x8x128xf32> to vector<64x128xf32>
    %74 = arith.truncf %73 : vector<64x128xf32> to vector<64x128xbf16>
    %c5 = arith.constant 5 : index
    %c0_80 = arith.constant 0 : index
    %c0_81 = arith.constant 0 : index
    %75 = vector.load %arg4[%c5, %c0_80, %c0_81] : memref<9x128x128xbf16, #tpu.memory_space<vmem>>, vector<1x128x128xbf16>
    %76 = vector.shape_cast %75 : vector<1x128x128xbf16> to vector<128x128xbf16>
    %cst_82 = arith.constant dense<0.000000e+00> : vector<64x128xf32>
    %77 = tpu.matmul %74, %76, %cst_82 {dimension_numbers = #tpu.dot_dimension_numbers<[1], [0], [0], [1], [0, 0, 1, 1], [], []>} : vector<64x128xbf16>, vector<128x128xbf16>, vector<64x128xf32> -> vector<64x128xf32>
    %78 = arith.addf %71, %77 : vector<64x128xf32>
    %c2_83 = arith.constant 2 : index
    %c0_84 = arith.constant 0 : index
    %c0_85 = arith.constant 0 : index
    %79 = vector.load %arg9[%c2_83, %c0_84, %c0_85] : memref<10x10x128xf32, #tpu.memory_space<vmem>>, vector<8x8x128xf32>
    %80 = vector.shape_cast %79 : vector<8x8x128xf32> to vector<64x128xf32>
    %81 = arith.truncf %80 : vector<64x128xf32> to vector<64x128xbf16>
    %c6 = arith.constant 6 : index
    %c0_86 = arith.constant 0 : index
    %c0_87 = arith.constant 0 : index
    %82 = vector.load %arg4[%c6, %c0_86, %c0_87] : memref<9x128x128xbf16, #tpu.memory_space<vmem>>, vector<1x128x128xbf16>
    %83 = vector.shape_cast %82 : vector<1x128x128xbf16> to vector<128x128xbf16>
    %cst_88 = arith.constant dense<0.000000e+00> : vector<64x128xf32>
    %84 = tpu.matmul %81, %83, %cst_88 {dimension_numbers = #tpu.dot_dimension_numbers<[1], [0], [0], [1], [0, 0, 1, 1], [], []>} : vector<64x128xbf16>, vector<128x128xbf16>, vector<64x128xf32> -> vector<64x128xf32>
    %85 = arith.addf %78, %84 : vector<64x128xf32>
    %c2_89 = arith.constant 2 : index
    %c1_90 = arith.constant 1 : index
    %c0_91 = arith.constant 0 : index
    %86 = vector.load %arg9[%c2_89, %c1_90, %c0_91] : memref<10x10x128xf32, #tpu.memory_space<vmem>>, vector<8x8x128xf32>
    %87 = vector.shape_cast %86 : vector<8x8x128xf32> to vector<64x128xf32>
    %88 = arith.truncf %87 : vector<64x128xf32> to vector<64x128xbf16>
    %c7 = arith.constant 7 : index
    %c0_92 = arith.constant 0 : index
    %c0_93 = arith.constant 0 : index
    %89 = vector.load %arg4[%c7, %c0_92, %c0_93] : memref<9x128x128xbf16, #tpu.memory_space<vmem>>, vector<1x128x128xbf16>
    %90 = vector.shape_cast %89 : vector<1x128x128xbf16> to vector<128x128xbf16>
    %cst_94 = arith.constant dense<0.000000e+00> : vector<64x128xf32>
    %91 = tpu.matmul %88, %90, %cst_94 {dimension_numbers = #tpu.dot_dimension_numbers<[1], [0], [0], [1], [0, 0, 1, 1], [], []>} : vector<64x128xbf16>, vector<128x128xbf16>, vector<64x128xf32> -> vector<64x128xf32>
    %92 = arith.addf %85, %91 : vector<64x128xf32>
    %c2_95 = arith.constant 2 : index
    %c2_96 = arith.constant 2 : index
    %c0_97 = arith.constant 0 : index
    %93 = vector.load %arg9[%c2_95, %c2_96, %c0_97] : memref<10x10x128xf32, #tpu.memory_space<vmem>>, vector<8x8x128xf32>
    %94 = vector.shape_cast %93 : vector<8x8x128xf32> to vector<64x128xf32>
    %95 = arith.truncf %94 : vector<64x128xf32> to vector<64x128xbf16>
    %c8 = arith.constant 8 : index
    %c0_98 = arith.constant 0 : index
    %c0_99 = arith.constant 0 : index
    %96 = vector.load %arg4[%c8, %c0_98, %c0_99] : memref<9x128x128xbf16, #tpu.memory_space<vmem>>, vector<1x128x128xbf16>
    %97 = vector.shape_cast %96 : vector<1x128x128xbf16> to vector<128x128xbf16>
    %cst_100 = arith.constant dense<0.000000e+00> : vector<64x128xf32>
    %98 = tpu.matmul %95, %97, %cst_100 {dimension_numbers = #tpu.dot_dimension_numbers<[1], [0], [0], [1], [0, 0, 1, 1], [], []>} : vector<64x128xbf16>, vector<128x128xbf16>, vector<64x128xf32> -> vector<64x128xf32>
    %99 = arith.addf %92, %98 : vector<64x128xf32>
    %c0_101 = arith.constant 0 : index
    %c0_102 = arith.constant 0 : index
    %100 = vector.load %arg5[%c0_101, %c0_102] : memref<1x128xf32, #tpu.memory_space<vmem>>, vector<1x128xf32>
    %101 = vector.broadcast %100 : vector<1x128xf32> to vector<64x128xf32>
    %102 = arith.addf %99, %101 : vector<64x128xf32>
    %cst_103 = arith.constant 0.000000e+00 : f32
    %103 = vector.broadcast %cst_103 : f32 to vector<64x128xf32>
    %104 = arith.maximumf %102, %103 : vector<64x128xf32>
    %105 = vector.shape_cast %104 : vector<64x128xf32> to vector<8x8x128xf32>
    %c1_104 = arith.constant 1 : index
    %c1_105 = arith.constant 1 : index
    %c0_106 = arith.constant 0 : index
    %106 = vector.load %arg10[%c1_104, %c1_105, %c0_106] : memref<10x10x128xf32, #tpu.memory_space<vmem>>, vector<8x8x128xf32>
    tpu.vector_store %arg10[%c1_104, %c1_105, %c0_106], %105 {strides = array<i32>} : memref<10x10x128xf32, #tpu.memory_space<vmem>>, vector<8x8x128xf32>,
    %cst_107 = arith.constant 0.000000e+00 : f32
    %107 = vector.broadcast %cst_107 : f32 to vector<64x128xf32>
    %c0_108 = arith.constant 0 : index
    %c0_109 = arith.constant 0 : index
    %c0_110 = arith.constant 0 : index
    %108 = vector.load %arg10[%c0_108, %c0_109, %c0_110] : memref<10x10x128xf32, #tpu.memory_space<vmem>>, vector<8x8x128xf32>
    %109 = vector.shape_cast %108 : vector<8x8x128xf32> to vector<64x128xf32>
    %110 = arith.truncf %109 : vector<64x128xf32> to vector<64x128xbf16>
    %c0_111 = arith.constant 0 : index
    %c0_112 = arith.constant 0 : index
    %c0_113 = arith.constant 0 : index
    %111 = vector.load %arg6[%c0_111, %c0_112, %c0_113] : memref<9x128x128xbf16, #tpu.memory_space<vmem>>, vector<1x128x128xbf16>
    %112 = vector.shape_cast %111 : vector<1x128x128xbf16> to vector<128x128xbf16>
    %cst_114 = arith.constant dense<0.000000e+00> : vector<64x128xf32>
    %113 = tpu.matmul %110, %112, %cst_114 {dimension_numbers = #tpu.dot_dimension_numbers<[1], [0], [0], [1], [0, 0, 1, 1], [], []>} : vector<64x128xbf16>, vector<128x128xbf16>, vector<64x128xf32> -> vector<64x128xf32>
    %114 = arith.addf %107, %113 : vector<64x128xf32>
    %c0_115 = arith.constant 0 : index
    %c1_116 = arith.constant 1 : index
    %c0_117 = arith.constant 0 : index
    %115 = vector.load %arg10[%c0_115, %c1_116, %c0_117] : memref<10x10x128xf32, #tpu.memory_space<vmem>>, vector<8x8x128xf32>
    %116 = vector.shape_cast %115 : vector<8x8x128xf32> to vector<64x128xf32>
    %117 = arith.truncf %116 : vector<64x128xf32> to vector<64x128xbf16>
    %c1_118 = arith.constant 1 : index
    %c0_119 = arith.constant 0 : index
    %c0_120 = arith.constant 0 : index
    %118 = vector.load %arg6[%c1_118, %c0_119, %c0_120] : memref<9x128x128xbf16, #tpu.memory_space<vmem>>, vector<1x128x128xbf16>
    %119 = vector.shape_cast %118 : vector<1x128x128xbf16> to vector<128x128xbf16>
    %cst_121 = arith.constant dense<0.000000e+00> : vector<64x128xf32>
    %120 = tpu.matmul %117, %119, %cst_121 {dimension_numbers = #tpu.dot_dimension_numbers<[1], [0], [0], [1], [0, 0, 1, 1], [], []>} : vector<64x128xbf16>, vector<128x128xbf16>, vector<64x128xf32> -> vector<64x128xf32>
    %121 = arith.addf %114, %120 : vector<64x128xf32>
    %c0_122 = arith.constant 0 : index
    %c2_123 = arith.constant 2 : index
    %c0_124 = arith.constant 0 : index
    %122 = vector.load %arg10[%c0_122, %c2_123, %c0_124] : memref<10x10x128xf32, #tpu.memory_space<vmem>>, vector<8x8x128xf32>
    %123 = vector.shape_cast %122 : vector<8x8x128xf32> to vector<64x128xf32>
    %124 = arith.truncf %123 : vector<64x128xf32> to vector<64x128xbf16>
    %c2_125 = arith.constant 2 : index
    %c0_126 = arith.constant 0 : index
    %c0_127 = arith.constant 0 : index
    %125 = vector.load %arg6[%c2_125, %c0_126, %c0_127] : memref<9x128x128xbf16, #tpu.memory_space<vmem>>, vector<1x128x128xbf16>
    %126 = vector.shape_cast %125 : vector<1x128x128xbf16> to vector<128x128xbf16>
    %cst_128 = arith.constant dense<0.000000e+00> : vector<64x128xf32>
    %127 = tpu.matmul %124, %126, %cst_128 {dimension_numbers = #tpu.dot_dimension_numbers<[1], [0], [0], [1], [0, 0, 1, 1], [], []>} : vector<64x128xbf16>, vector<128x128xbf16>, vector<64x128xf32> -> vector<64x128xf32>
    %128 = arith.addf %121, %127 : vector<64x128xf32>
    %c1_129 = arith.constant 1 : index
    %c0_130 = arith.constant 0 : index
    %c0_131 = arith.constant 0 : index
    %129 = vector.load %arg10[%c1_129, %c0_130, %c0_131] : memref<10x10x128xf32, #tpu.memory_space<vmem>>, vector<8x8x128xf32>
    %130 = vector.shape_cast %129 : vector<8x8x128xf32> to vector<64x128xf32>
    %131 = arith.truncf %130 : vector<64x128xf32> to vector<64x128xbf16>
    %c3_132 = arith.constant 3 : index
    %c0_133 = arith.constant 0 : index
    %c0_134 = arith.constant 0 : index
    %132 = vector.load %arg6[%c3_132, %c0_133, %c0_134] : memref<9x128x128xbf16, #tpu.memory_space<vmem>>, vector<1x128x128xbf16>
    %133 = vector.shape_cast %132 : vector<1x128x128xbf16> to vector<128x128xbf16>
    %cst_135 = arith.constant dense<0.000000e+00> : vector<64x128xf32>
    %134 = tpu.matmul %131, %133, %cst_135 {dimension_numbers = #tpu.dot_dimension_numbers<[1], [0], [0], [1], [0, 0, 1, 1], [], []>} : vector<64x128xbf16>, vector<128x128xbf16>, vector<64x128xf32> -> vector<64x128xf32>
    %135 = arith.addf %128, %134 : vector<64x128xf32>
    %c1_136 = arith.constant 1 : index
    %c1_137 = arith.constant 1 : index
    %c0_138 = arith.constant 0 : index
    %136 = vector.load %arg10[%c1_136, %c1_137, %c0_138] : memref<10x10x128xf32, #tpu.memory_space<vmem>>, vector<8x8x128xf32>
    %137 = vector.shape_cast %136 : vector<8x8x128xf32> to vector<64x128xf32>
    %138 = arith.truncf %137 : vector<64x128xf32> to vector<64x128xbf16>
    %c4_139 = arith.constant 4 : index
    %c0_140 = arith.constant 0 : index
    %c0_141 = arith.constant 0 : index
    %139 = vector.load %arg6[%c4_139, %c0_140, %c0_141] : memref<9x128x128xbf16, #tpu.memory_space<vmem>>, vector<1x128x128xbf16>
    %140 = vector.shape_cast %139 : vector<1x128x128xbf16> to vector<128x128xbf16>
    %cst_142 = arith.constant dense<0.000000e+00> : vector<64x128xf32>
    %141 = tpu.matmul %138, %140, %cst_142 {dimension_numbers = #tpu.dot_dimension_numbers<[1], [0], [0], [1], [0, 0, 1, 1], [], []>} : vector<64x128xbf16>, vector<128x128xbf16>, vector<64x128xf32> -> vector<64x128xf32>
    %142 = arith.addf %135, %141 : vector<64x128xf32>
    %c1_143 = arith.constant 1 : index
    %c2_144 = arith.constant 2 : index
    %c0_145 = arith.constant 0 : index
    %143 = vector.load %arg10[%c1_143, %c2_144, %c0_145] : memref<10x10x128xf32, #tpu.memory_space<vmem>>, vector<8x8x128xf32>
    %144 = vector.shape_cast %143 : vector<8x8x128xf32> to vector<64x128xf32>
    %145 = arith.truncf %144 : vector<64x128xf32> to vector<64x128xbf16>
    %c5_146 = arith.constant 5 : index
    %c0_147 = arith.constant 0 : index
    %c0_148 = arith.constant 0 : index
    %146 = vector.load %arg6[%c5_146, %c0_147, %c0_148] : memref<9x128x128xbf16, #tpu.memory_space<vmem>>, vector<1x128x128xbf16>
    %147 = vector.shape_cast %146 : vector<1x128x128xbf16> to vector<128x128xbf16>
    %cst_149 = arith.constant dense<0.000000e+00> : vector<64x128xf32>
    %148 = tpu.matmul %145, %147, %cst_149 {dimension_numbers = #tpu.dot_dimension_numbers<[1], [0], [0], [1], [0, 0, 1, 1], [], []>} : vector<64x128xbf16>, vector<128x128xbf16>, vector<64x128xf32> -> vector<64x128xf32>
    %149 = arith.addf %142, %148 : vector<64x128xf32>
    %c2_150 = arith.constant 2 : index
    %c0_151 = arith.constant 0 : index
    %c0_152 = arith.constant 0 : index
    %150 = vector.load %arg10[%c2_150, %c0_151, %c0_152] : memref<10x10x128xf32, #tpu.memory_space<vmem>>, vector<8x8x128xf32>
    %151 = vector.shape_cast %150 : vector<8x8x128xf32> to vector<64x128xf32>
    %152 = arith.truncf %151 : vector<64x128xf32> to vector<64x128xbf16>
    %c6_153 = arith.constant 6 : index
    %c0_154 = arith.constant 0 : index
    %c0_155 = arith.constant 0 : index
    %153 = vector.load %arg6[%c6_153, %c0_154, %c0_155] : memref<9x128x128xbf16, #tpu.memory_space<vmem>>, vector<1x128x128xbf16>
    %154 = vector.shape_cast %153 : vector<1x128x128xbf16> to vector<128x128xbf16>
    %cst_156 = arith.constant dense<0.000000e+00> : vector<64x128xf32>
    %155 = tpu.matmul %152, %154, %cst_156 {dimension_numbers = #tpu.dot_dimension_numbers<[1], [0], [0], [1], [0, 0, 1, 1], [], []>} : vector<64x128xbf16>, vector<128x128xbf16>, vector<64x128xf32> -> vector<64x128xf32>
    %156 = arith.addf %149, %155 : vector<64x128xf32>
    %c2_157 = arith.constant 2 : index
    %c1_158 = arith.constant 1 : index
    %c0_159 = arith.constant 0 : index
    %157 = vector.load %arg10[%c2_157, %c1_158, %c0_159] : memref<10x10x128xf32, #tpu.memory_space<vmem>>, vector<8x8x128xf32>
    %158 = vector.shape_cast %157 : vector<8x8x128xf32> to vector<64x128xf32>
    %159 = arith.truncf %158 : vector<64x128xf32> to vector<64x128xbf16>
    %c7_160 = arith.constant 7 : index
    %c0_161 = arith.constant 0 : index
    %c0_162 = arith.constant 0 : index
    %160 = vector.load %arg6[%c7_160, %c0_161, %c0_162] : memref<9x128x128xbf16, #tpu.memory_space<vmem>>, vector<1x128x128xbf16>
    %161 = vector.shape_cast %160 : vector<1x128x128xbf16> to vector<128x128xbf16>
    %cst_163 = arith.constant dense<0.000000e+00> : vector<64x128xf32>
    %162 = tpu.matmul %159, %161, %cst_163 {dimension_numbers = #tpu.dot_dimension_numbers<[1], [0], [0], [1], [0, 0, 1, 1], [], []>} : vector<64x128xbf16>, vector<128x128xbf16>, vector<64x128xf32> -> vector<64x128xf32>
    %163 = arith.addf %156, %162 : vector<64x128xf32>
    %c2_164 = arith.constant 2 : index
    %c2_165 = arith.constant 2 : index
    %c0_166 = arith.constant 0 : index
    %164 = vector.load %arg10[%c2_164, %c2_165, %c0_166] : memref<10x10x128xf32, #tpu.memory_space<vmem>>, vector<8x8x128xf32>
    %165 = vector.shape_cast %164 : vector<8x8x128xf32> to vector<64x128xf32>
    %166 = arith.truncf %165 : vector<64x128xf32> to vector<64x128xbf16>
    %c8_167 = arith.constant 8 : index
    %c0_168 = arith.constant 0 : index
    %c0_169 = arith.constant 0 : index
    %167 = vector.load %arg6[%c8_167, %c0_168, %c0_169] : memref<9x128x128xbf16, #tpu.memory_space<vmem>>, vector<1x128x128xbf16>
    %168 = vector.shape_cast %167 : vector<1x128x128xbf16> to vector<128x128xbf16>
    %cst_170 = arith.constant dense<0.000000e+00> : vector<64x128xf32>
    %169 = tpu.matmul %166, %168, %cst_170 {dimension_numbers = #tpu.dot_dimension_numbers<[1], [0], [0], [1], [0, 0, 1, 1], [], []>} : vector<64x128xbf16>, vector<128x128xbf16>, vector<64x128xf32> -> vector<64x128xf32>
    %170 = arith.addf %163, %169 : vector<64x128xf32>
    %c1_171 = arith.constant 1 : index
    %c1_172 = arith.constant 1 : index
    %c0_173 = arith.constant 0 : index
    %171 = vector.load %arg9[%c1_171, %c1_172, %c0_173] : memref<10x10x128xf32, #tpu.memory_space<vmem>>, vector<8x8x128xf32>
    %172 = vector.shape_cast %171 : vector<8x8x128xf32> to vector<64x128xf32>
    %c0_174 = arith.constant 0 : index
    %c0_175 = arith.constant 0 : index
    %173 = vector.load %arg7[%c0_174, %c0_175] : memref<1x128xf32, #tpu.memory_space<vmem>>, vector<1x128xf32>
    %174 = vector.broadcast %173 : vector<1x128xf32> to vector<64x128xf32>
    %175 = arith.addf %170, %174 : vector<64x128xf32>
    %176 = arith.addf %175, %172 : vector<64x128xf32>
    %cst_176 = arith.constant 0.000000e+00 : f32
    %177 = vector.broadcast %cst_176 : f32 to vector<64x128xf32>
    %178 = arith.maximumf %176, %177 : vector<64x128xf32>
    %179 = vector.shape_cast %178 : vector<64x128xf32> to vector<1x64x128xf32>
    %c0_177 = arith.constant 0 : index
    %c0_178 = arith.constant 0 : index
    %c0_179 = arith.constant 0 : index
    %180 = vector.load %arg8[%c0_177, %c0_178, %c0_179] : memref<1x64x128xf32, #tpu.memory_space<vmem>>, vector<1x64x128xf32>
    tpu.vector_store %arg8[%c0_177, %c0_178, %c0_179], %179 {strides = array<i32>} : memref<1x64x128xf32, #tpu.memory_space<vmem>>, vector<1x64x128xf32>,
    return
  }
  func.func @transform_0(%arg0: i32) -> (i32, i32, i32, i32) {
    %c0_i32 = arith.constant 0 : i32
    %c0_i32_0 = arith.constant 0 : i32
    %c0_i32_1 = arith.constant 0 : i32
    %c0_i32_2 = arith.constant 0 : i32
    return %arg0, %c0_i32, %c0_i32_0, %c0_i32_1 : i32, i32, i32, i32
  }
  func.func @transform_1(%arg0: i32) -> (i32, i32, i32) {
    %c0_i32 = arith.constant 0 : i32
    %c0_i32_0 = arith.constant 0 : i32
    %c0_i32_1 = arith.constant 0 : i32
    %c0_i32_2 = arith.constant 0 : i32
    return %c0_i32, %c0_i32_0, %c0_i32_1 : i32, i32, i32
  }
  func.func @transform_2(%arg0: i32) -> (i32, i32) {
    %c0_i32 = arith.constant 0 : i32
    %c0_i32_0 = arith.constant 0 : i32
    %c0_i32_1 = arith.constant 0 : i32
    return %c0_i32, %c0_i32_0 : i32, i32
  }
  func.func @transform_3(%arg0: i32) -> (i32, i32, i32) {
    %c0_i32 = arith.constant 0 : i32
    %c0_i32_0 = arith.constant 0 : i32
    %c0_i32_1 = arith.constant 0 : i32
    %c0_i32_2 = arith.constant 0 : i32
    return %c0_i32, %c0_i32_0, %c0_i32_1 : i32, i32, i32
  }
  func.func @transform_4(%arg0: i32) -> (i32, i32) {
    %c0_i32 = arith.constant 0 : i32
    %c0_i32_0 = arith.constant 0 : i32
    %c0_i32_1 = arith.constant 0 : i32
    return %c0_i32, %c0_i32_0 : i32, i32
  }
  func.func @transform_5(%arg0: i32) -> (i32, i32, i32) {
    %c0_i32 = arith.constant 0 : i32
    %c0_i32_0 = arith.constant 0 : i32
    %c0_i32_1 = arith.constant 0 : i32
    %c0_i32_2 = arith.constant 0 : i32
    return %c0_i32, %c0_i32_0, %c0_i32_1 : i32, i32, i32
  }
  func.func @transform_6(%arg0: i32) -> (i32, i32) {
    %c0_i32 = arith.constant 0 : i32
    %c0_i32_0 = arith.constant 0 : i32
    %c0_i32_1 = arith.constant 0 : i32
    return %c0_i32, %c0_i32_0 : i32, i32
  }
  func.func @transform_7(%arg0: i32) -> (i32, i32, i32) {
    %c0_i32 = arith.constant 0 : i32
    %c0_i32_0 = arith.constant 0 : i32
    %c0_i32_1 = arith.constant 0 : i32
    return %arg0, %c0_i32, %c0_i32_0 : i32, i32, i32
  }
}

</mosaic_0001>

<bundles_post_ra>
// kernel: encoder_block_forward.1
= control target key start
LH: loop header
LB: loop body
LE: loop exit
PB: predicated region body
PF: predicated region fallthrough
CT: control target
= control target key end

     0   :  { %s5403_s24 = smov 0   ;;  %s6365_s0 = inlined_call_operand.vmem [shape: bf16[2,9,9,16], index: 0, kind: input, shape index: {}]   ;;  %s6366_s1 = inlined_call_operand.vmem [shape: bf16[4,16,128], index: 1, kind: input, shape index: {}]   ;;  %s6367_s2 = inlined_call_operand.vmem [shape: f32[1,128], index: 2, kind: input, shape index: {}]   ;;  %s6368_s3 = inlined_call_operand.vmem [shape: bf16[9,128,128], index: 3, kind: input, shape index: {}]   ;;  %s6369_s4 = inlined_call_operand.vmem [shape: f32[1,128], index: 4, kind: input, shape index: {}]   ;;  %s6370_s5 = inlined_call_operand.vmem [shape: bf16[9,128,128], index: 5, kind: input, shape index: {}]   ;;  %s6371_s6 = inlined_call_operand.vmem [shape: f32[1,128], index: 6, kind: input, shape index: {}]   ;;  %s6372_s7 = inlined_call_operand.vmem [shape: f32[2,64,128], index: 7, kind: output, shape index: {}]  }
   0x1 LB: > { %s3846_s25 = sadd.s32 4294967295, %s5360_s24   ;;  %p3850_p0 = scmp.ge.s32.totalorder %s5360_s24, 1  ;;  %s5360_s24 = sphi %s5403_s24, %s17_s24  }
   0x2   : > { %p237_p1 = scmp.lt.s32.totalorder %s5360_s24, 3 }
   0x4   : > { %p238_p2 = pnand %p3850_p0, %p237_p1 }
   0x5   : > { %v5196_v0 = vld [vmem:[%s6366_s1 + $0x8] sm:$0xff] (!%p238_p2)   ;;  %p269_p3 = scmp.lt.s32.totalorder (!%p238_p2), %s3846_s25, 1  ;;  %v5417_v1 = vld [vmem:[%s6366_s1] sm:$0xff] (!%p238_p2)   ;;  %vm338_vm0 = vsmask.f32 (!%p238_p2), 3328  ;;  %v5362_v2 = vmov (!%p238_p2), 0.0  }
   0x6   : > { %241 = sbr.rel (%p238_p2) target bundleno = 1250 (0x4e2), region = 48  ;;  %4562 = vmatprep.subr.bf16.mxu0 (!%p238_p2), %v5196_v0  ;;  %vm339_vm1 = vsmask.f32 (!%p238_p2), 7440  ;;  %286 = vst [vmem:[#allocation2 + $0x30] sm:$0xff] (!%p238_p2), %v5362_v2  ;;  %287 = vst [vmem:[#allocation2 + $0x38] sm:$0x3] (!%p238_p2), %v5362_v2 }
   0x7   : > { %4563 = vmatpush3.bf16.msra.mxu0 (!%p238_p2), %v5196_v0  ;;  %280 = vst [vmem:[#allocation2] sm:$0xff] (!%p238_p2), %v5362_v2  ;;  %281 = vst [vmem:[#allocation2 + $0x8] sm:$0x3] (!%p238_p2), %v5362_v2  ;;  %v5208_v3 = vld [vmem:[%s6368_s3 + $0x40] sm:$0xff] (!%p238_p2)   ;;  %v5209_v4 = vld [vmem:[%s6368_s3 + $0x48] sm:$0xff] (!%p238_p2)   ;;  %vm474_vm2 = vcmask (!%p238_p2), 130048  }
   0x8   : > { %282 = vst [vmem:[#allocation2 + $0x10] sm:$0xff] (!%p238_p2), %v5362_v2  ;;  %283 = vst [vmem:[#allocation2 + $0x18] sm:$0x3] (!%p238_p2), %v5362_v2  ;;  %4572 = vmatprep.subr.bf16.mxu0 (!%p238_p2), %v5417_v1  ;;  %4602 = vmatprep.subr.bf16.mxu1 (!%p238_p2), %v5208_v3  ;;  %v5210_v32 = vld [vmem:[%s6368_s3 + $0x50] sm:$0xff] (!%p238_p2)   ;;  %v5211_v39 = vld [vmem:[%s6368_s3 + $0x58] sm:$0xff] (!%p238_p2)  }
   0x9   : > { %284 = vst [vmem:[#allocation2 + $0x20] sm:$0xff] (!%p238_p2), %v5362_v2  ;;  %285 = vst [vmem:[#allocation2 + $0x28] sm:$0x3] (!%p238_p2), %v5362_v2  ;;  %4603 = vmatpush3.bf16.msra.mxu1 (!%p238_p2), %v5208_v3  ;;  %v5214_v33 = vld [vmem:[%s6368_s3 + $0x70] sm:$0xff] (!%p238_p2)  }
   0xa   : > { %288 = vst [vmem:[#allocation2 + $0x40] sm:$0xff] (!%p238_p2), %v5362_v2  ;;  %289 = vst [vmem:[#allocation2 + $0x48] sm:$0x3] (!%p238_p2), %v5362_v2  ;;  %4604 = vmatprep.subr.bf16.mxu1 (!%p238_p2), %v5209_v4 }
   0xb   : > { %290 = vst [vmem:[#allocation2 + $0x50] sm:$0xff] (!%p238_p2), %v5362_v2  ;;  %291 = vst [vmem:[#allocation2 + $0x58] sm:$0x3] (!%p238_p2), %v5362_v2 }
   0xc   : > { %292 = vst [vmem:[#allocation2 + $0x60] sm:$0xff] (!%p238_p2), %v5362_v2  ;;  %293 = vst [vmem:[#allocation2 + $0x68] sm:$0x3] (!%p238_p2), %v5362_v2 }
   0xd   : > { %s6376_s25 = smov (!%p269_p3, %s3846_s25), 1  ;;  %294 = vst [vmem:[#allocation2 + $0x70] sm:$0xff] %v5362_v2  ;;  %295 = vst [vmem:[#allocation2 + $0x78] sm:$0x3] %v5362_v2  ;;  %4605 = vmatpush3.bf16.msra.mxu1 %v5209_v4 }
   0xe   : > { %296 = vst [vmem:[#allocation2 + $0x80] sm:$0xff] %v5362_v2  ;;  %297 = vst [vmem:[#allocation2 + $0x88] sm:$0x3] %v5362_v2  ;;  %s5186_s30 = smul.u32 72, %s6376_s25  ;;  %4606 = vmatprep.subr.bf16.mxu1 %v5210_v32  ;;  %s4325_s15 = sshll.u32 %s6376_s25, 6 }
   0xf   : > { %298 = vst [vmem:[#allocation2 + $0x90] sm:$0xff] %v5362_v2  ;;  %299 = vst [vmem:[#allocation2 + $0x98] sm:$0x3] %v5362_v2  ;;  %s6352_s18 = scalar_lea.vmem %s6372_s7, %s4325_s15 }
  0x10   : > { %300 = vst [vmem:[#allocation3] sm:$0xff] %v5362_v2  ;;  %301 = vst [vmem:[#allocation3 + $0x8] sm:$0x3] %v5362_v2  ;;  %s5429_s12 = scalar_lea.vmem %s6365_s0, %s5186_s30 }
  0x11   : > { %302 = vst [vmem:[#allocation3 + $0x10] sm:$0xff] %v5362_v2  ;;  %303 = vst [vmem:[#allocation3 + $0x18] sm:$0x3] %v5362_v2  ;;  %v5435_v5 = vld [vmem:[%s5429_s12] sm:$0xf]  ;;  %4607 = vmatpush3.bf16.msra.mxu1 %v5210_v32 }
  0x12   : > { %304 = vst [vmem:[#allocation3 + $0x20] sm:$0xff] %v5362_v2  ;;  %305 = vst [vmem:[#allocation3 + $0x28] sm:$0x3] %v5362_v2  ;;  %v5438_v6 = vld [vmem:[%s5429_s12 + $0x8] sm:$0xf]  ;;  %v342_v9 = vshrl.u32 %v5435_v5, 16  ;;  %4608 = vmatprep.subr.bf16.mxu1 %v5211_v39 }
  0x13   : > { %306 = vst [vmem:[#allocation3 + $0x30] sm:$0xff] %v5362_v2  ;;  %307 = vst [vmem:[#allocation3 + $0x38] sm:$0x3] %v5362_v2  ;;  %v330_v7 = vld [vmem:[%s5429_s12 + $0x4] sm:$0x1]  ;;  %v345_v10 = vshll.u32 %v5435_v5, 16 }
  0x14   : > { %308 = vst [vmem:[#allocation3 + $0x40] sm:$0xff] %v5362_v2  ;;  %309 = vst [vmem:[#allocation3 + $0x48] sm:$0x3] %v5362_v2  ;;  %v331_v8 = vld [vmem:[%s5429_s12 + $0xc] sm:$0x1]  ;;  %v351_v11 = vshll.u32 %v330_v7, 16 }
  0x15   : > { %310 = vst [vmem:[#allocation3 + $0x50] sm:$0xff] %v5362_v2  ;;  %311 = vst [vmem:[#allocation3 + $0x58] sm:$0x3] %v5362_v2  ;;  %v356_v12 = vshrl.u32 %v5438_v6, 16  ;;  %v359_v13 = vshll.u32 %v5438_v6, 16  ;;  %v365_v14 = vshll.u32 %v331_v8, 16  ;;  %4609 = vmatpush3.bf16.msra.mxu1 %v5211_v39 }
  0x16   : > { %312 = vst [vmem:[#allocation3 + $0x60] sm:$0xff] %v5362_v2  ;;  %313 = vst [vmem:[#allocation3 + $0x68] sm:$0x3] %v5362_v2  ;;  %v5447_v15 = vld [vmem:[%s5429_s12 + $0x10] sm:$0xf]  ;;  %v344_v17 = vrot.slane %v342_v9, 4 }
  0x17   : > { %314 = vst [vmem:[#allocation3 + $0x70] sm:$0xff] %v5362_v2  ;;  %315 = vst [vmem:[#allocation3 + $0x78] sm:$0x3] %v5362_v2  ;;  %v5450_v16 = vld [vmem:[%s5429_s12 + $0x18] sm:$0xf]  ;;  %v347_v18 = vrot.slane %v345_v10, 5 }
  0x18   : > { %316 = vst [vmem:[#allocation3 + $0x80] sm:$0xff] %v5362_v2  ;;  %317 = vst [vmem:[#allocation3 + $0x88] sm:$0x3] %v5362_v2  ;;  %v353_v19 = vrot.slane %v351_v11, 5  ;;  %v358_v20 = vrot.slane %v356_v12, 4  ;;  %v361_v22 = vrot.slane %v359_v13, 5 }
  0x19   : > { %318 = vst [vmem:[#allocation3 + $0x90] sm:$0xff] %v5362_v2  ;;  %319 = vst [vmem:[#allocation3 + $0x98] sm:$0x3] %v5362_v2  ;;  %v332_v21 = vld [vmem:[%s5429_s12 + $0x14] sm:$0x1]  ;;  %v367_v23 = vrot.slane %v365_v14, 5  ;;  %v348_v27 = vor.u32 %v347_v18, %v344_v17 }
  0x1a   : > { %v333_v24 = vld [vmem:[%s5429_s12 + $0x1c] sm:$0x1]  ;;  %v370_v25 = vshrl.u32 %v5447_v15, 16  ;;  %v373_v26 = vshll.u32 %v5447_v15, 16  ;;  %v379_v28 = vshll.u32 %v332_v21, 16  ;;  %v384_v29 = vshrl.u32 %v5450_v16, 16  ;;  %vm5466_vm3 = vmor %vm338_vm0, %vm339_vm1 }
  0x1b   : > { %v387_v30 = vshll.u32 %v5450_v16, 16  ;;  %v5459_v31 = vld [vmem:[%s5429_s12 + $0x20] sm:$0xf]  ;;  %v362_v34 = vor.u32 %v361_v22, %v358_v20  ;;  %v393_v37 = vshll.u32 %v333_v24, 16  ;;  %v5471_v38 = vld [vmem:[%s5429_s12 + $0x28] sm:$0xf] }
  0x1c   : > { %v372_v35 = vrot.slane %v370_v25, 4  ;;  %v375_v36 = vrot.slane %v373_v26, 5  ;;  %v349_v40 = vrot.slane %v348_v27, 4  ;;  %v381_v41 = vrot.slane %v379_v28, 5  ;;  %v334_v44 = vld [vmem:[%s5429_s12 + $0x24] sm:$0x1] }
  0x1d   : > { %v386_v42 = vrot.slane %v384_v29, 4  ;;  %v389_v43 = vrot.slane %v387_v30, 5  ;;  %v363_v45 = vrot.slane %v362_v34, 4  ;;  %v395_v47 = vrot.slane %v393_v37, 5  ;;  %v335_v51 = vld [vmem:[%s5429_s12 + $0x2c] sm:$0x1] }
  0x1e   : > { %v376_v46 = vor.u32 %v375_v36, %v372_v35  ;;  %v398_v48 = vshrl.u32 %v5459_v31, 16  ;;  %v354_v49 = vsel %vm5466_vm3, %v349_v40, %v353_v19  ;;  %v401_v52 = vshll.u32 %v5459_v31, 16  ;;  %v5486_v58 = vld [vmem:[%s5429_s12 + $0x30] sm:$0xf]  ;;  %v5489_v62 = vld [vmem:[%s5429_s12 + $0x38] sm:$0xf] }
  0x1f   : > { %v390_v50 = vor.u32 %v389_v43, %v386_v42  ;;  %v407_v53 = vshll.u32 %v334_v44, 16  ;;  %v368_v54 = vsel %vm5466_vm3, %v363_v45, %v367_v23  ;;  %v412_v57 = vshrl.u32 %v5471_v38, 16  ;;  %v336_v63 = vld [vmem:[%s5429_s12 + $0x34] sm:$0x1]  ;;  %v337_v9 = vld [vmem:[%s5429_s12 + $0x3c] sm:$0x1] }
  0x20   : > { %v377_v55 = vrot.slane %v376_v46, 4  ;;  %v400_v56 = vrot.slane %v398_v48, 4  ;;  %v3856_v59 = vcombine.low %v354_v49, %v368_v54  ;;  %v403_v61 = vrot.slane %v401_v52, 5  ;;  %v5504_v18 = vld [vmem:[%s6366_s1 + $0x10] sm:$0xff]   ;;  %v3894_v40 = vld [vmem:[%s5429_s12 + $0xc] sm:$0x1] }
  0x21   : > { %v391_v60 = vrot.slane %v390_v50, 4  ;;  %v414_v2 = vrot.slane %v412_v57, 4  ;;  %v415_v3 = vshll.u32 %v5471_v38, 16  ;;  %v421_v4 = vshll.u32 %v335_v51, 16  ;;  %v3895_v43 = vld [vmem:[%s5429_s12 + $0x10] sm:$0xf] }
  0x22   : > { %v382_v0 = vsel %vm5466_vm3, %v377_v55, %v381_v41  ;;  %4564 = vmatprep.mubr.msk.bf16.mxu0 %vm474_vm2, %v3856_v59  ;;  %v404_v8 = vor.u32 %v403_v61, %v400_v56  ;;  %v426_v10 = vshrl.u32 %v5486_v58, 16  ;;  %v429_v11 = vshll.u32 %v5486_v58, 16  ;;  %v3896_v44 = vld [vmem:[%s5429_s12 + $0x14] sm:$0x1]  ;;  %v3897_v51 = vld [vmem:[%s5429_s12 + $0x18] sm:$0xf] }
  0x23   : > { %v396_v7 = vsel %vm5466_vm3, %v391_v60, %v395_v47  ;;  %v409_v13 = vrot.slane %v407_v53, 5  ;;  %v417_v14 = vrot.slane %v415_v3, 5  ;;  %v435_v17 = vshll.u32 %v336_v63, 16  ;;  %v3899_v60 = vld [vmem:[%s5429_s12 + $0x20] sm:$0xf] }
  0x24   : > { %v3857_v12 = vcombine.low %v382_v0, %v396_v7  ;;  %v405_v19 = vrot.slane %v404_v8, 4  ;;  %v428_v20 = vrot.slane %v426_v10, 4  ;;  %v431_v21 = vrot.slane %v429_v11, 5  ;;  %v3901_v0 = vld [vmem:[%s5429_s12 + $0x28] sm:$0xf] }
  0x25   : > { %v440_v22 = vshrl.u32 %v5489_v62, 16  ;;  %v418_v23 = vor.u32 %v417_v14, %v414_v2  ;;  %v423_v24 = vrot.slane %v421_v4, 5  ;;  %v443_v25 = vshll.u32 %v5489_v62, 16  ;;  %v3900_v3 = vld [vmem:[%s5429_s12 + $0x24] sm:$0x1] }
  0x26   : > { %4565 = vmatmul.mubr.msk.bf16.vlgmr.msra.gmra.mrb[0].mxu0 %vm474_vm2, %v3857_v12  ;;  %v449_v26 = vshll.u32 %v337_v9, 16  ;;  %v432_v27 = vor.u32 %v431_v21, %v428_v20  ;;  %v410_v29 = vsel %vm5466_vm3, %v405_v19, %v409_v13  ;;  %v437_v32 = vrot.slane %v435_v17, 5  ;;  %v3903_v20 = vld [vmem:[%s5429_s12 + $0x30] sm:$0xf] }
  0x27   : > { %4573 = vmatpush3.bf16.msra.mxu0 %v5417_v1  ;;  %v442_v28 = vrot.slane %v440_v22, 4  ;;  %v419_v30 = vrot.slane %v418_v23, 4  ;;  %v445_v34 = vrot.slane %v443_v25, 5  ;;  %v3893_v1 = vld [vmem:[%s5429_s12 + $0x8] sm:$0xf]  ;;  %v3865_v42 = vcombine.low %v5435_v5, %v5438_v6 }
  0x28   : > { %4582 = vmatprep.subr.bf16.mxu0 %v5504_v18  ;;  %v433_v35 = vrot.slane %v432_v27, 4  ;;  %v451_v39 = vrot.slane %v449_v26, 5  ;;  %v795_v45 = vshrl.u32 %v3893_v1, 16  ;;  %v798_v46 = vshll.u32 %v3893_v1, 16  ;;  %v3898_v5 = vld [vmem:[%s5429_s12 + $0x1c] sm:$0x1] }
  0x29   : > { %v424_v36 = vsel %vm5466_vm3, %v419_v30, %v423_v24  ;;  %v446_v37 = vor.u32 %v445_v34, %v442_v28  ;;  %v809_v49 = vshrl.u32 %v3895_v43, 16  ;;  %v812_v50 = vshll.u32 %v3895_v43, 16  ;;  %v3902_v25 = vld [vmem:[%s5429_s12 + $0x2c] sm:$0x1]  ;;  %v3904_v26 = vld [vmem:[%s5429_s12 + $0x34] sm:$0x1] }
  0x2a   : > { %v3858_v41 = vcombine.low %v410_v29, %v424_v36  ;;  %v438_v47 = vsel %vm5466_vm3, %v433_v35, %v437_v32  ;;  %v797_v52 = vrot.slane %v795_v45, 4  ;;  %v800_v53 = vrot.slane %v798_v46, 5  ;;  %v3905_v29 = vld [vmem:[%s5429_s12 + $0x38] sm:$0xf]  ;;  %v3908_v43 = vld [vmem:[%s5429_s12 + $0x44] sm:$0x1] }
  0x2b   : > { %v447_v48 = vrot.slane %v446_v37, 4  ;;  %v804_v54 = vshll.u32 %v3894_v40, 16  ;;  %v823_v6 = vshrl.u32 %v3897_v51, 16  ;;  %v811_v56 = vrot.slane %v809_v49, 4  ;;  %v5204_v32 = vld [vmem:[%s6366_s1 + $0x18] sm:$0xff]  }
  0x2c   : > { %4568 = vmatprep.mubr.msk.bf16.mxu0 %vm474_vm2, %v3858_v41  ;;  %v814_v57 = vrot.slane %v812_v50, 5  ;;  %v818_v59 = vshll.u32 %v3896_v44, 16  ;;  %v801_v63 = vor.u32 %v800_v53, %v797_v52  ;;  %v826_v4 = vshll.u32 %v3897_v51, 16  ;;  %v3906_v37 = vld [vmem:[%s5429_s12 + $0x3c] sm:$0x1] }
  0x2d   : > { %v452_v55 = vsel %vm5466_vm3, %v447_v48, %v451_v39  ;;  %v832_v7 = vshll.u32 %v3898_v5, 16  ;;  %v837_v8 = vshrl.u32 %v3899_v60, 16  ;;  %v5532_v9 = vrot.slane %v804_v54, 5  ;;  %v3907_v39 = vld [vmem:[%s5429_s12 + $0x40] sm:$0xf] }
  0x2e   : > { %v3859_v61 = vcombine.low %v438_v47, %v452_v55  ;;  %v815_v2 = vor.u32 %v814_v57, %v811_v56  ;;  %v825_v10 = vrot.slane %v823_v6, 4  ;;  %v840_v11 = vshll.u32 %v3899_v60, 16  ;;  %v5203_v56 = vld [vmem:[%s5429_s12 + $0x8] ss:$8 sps:$4 sm:$0xff]  }
  0x2f   : > { %v851_v12 = vshrl.u32 %v3901_v0, 16  ;;  %v5535_v13 = vrot.slane %v801_v63, 4  ;;  %v5537_v14 = vrot.slane %v818_v59, 5  ;;  %v828_v17 = vrot.slane %v826_v4, 5 }
  0x30   : > { %4569 = vmatmul.mubr.msk.bf16.gmra.mrb[4].mxu0 %vm474_vm2, %v3859_v61  ;;  %v839_v19 = vrot.slane %v837_v8, 4  ;;  %v5540_v21 = vrot.slane %v815_v2, 4  ;;  %v5542_v22 = vrot.slane %v832_v7, 5  ;;  %v842_v23 = vrot.slane %v840_v11, 5  ;;  %v5205_v8 = vld [vmem:[%s5429_s12 + $0x18] ss:$8 sps:$4 sm:$0xff]  }
  0x31   : > { %4574 = vmatprep.mubr.msk.bf16.mxu0 %vm474_vm2, %v3865_v42  ;;  %v846_v24 = vshll.u32 %v3900_v3, 16  ;;  %v853_v27 = vrot.slane %v851_v12, 4  ;;  %v854_v28 = vshll.u32 %v3901_v0, 16  ;;  %v3866_v30 = vcombine.low %v5447_v15, %v5450_v16 }
  0x32   : > { %v829_v34 = vor.u32 %v828_v17, %v825_v10  ;;  %v865_v35 = vshrl.u32 %v3903_v20, 16  ;;  %v868_v36 = vshll.u32 %v3903_v20, 16  ;;  %v3867_v1 = vcombine.low %v5459_v31, %v5471_v38  ;;  %v5206_v10 = vld [vmem:[%s5429_s12 + $0x28] ss:$8 sps:$4 sm:$0xff]  }
  0x33   : > { %v843_v40 = vor.u32 %v842_v23, %v839_v19  ;;  %v856_v41 = vrot.slane %v854_v28, 5  ;;  %v860_v42 = vshll.u32 %v3902_v25, 16  ;;  %v874_v46 = vshll.u32 %v3904_v26, 16  ;;  %v5213_v25 = vld [vmem:[%s6368_s3 + $0x68] sm:$0xff]   ;;  %v5215_v26 = vld [vmem:[%s6368_s3 + $0x78] sm:$0xff]  }
  0x34   : > { %v867_v44 = vrot.slane %v865_v35, 4  ;;  %v870_v45 = vrot.slane %v868_v36, 5  ;;  %v879_v15 = vshrl.u32 %v3905_v29, 16  ;;  %v848_v16 = vrot.slane %v846_v24, 5  ;;  %v5212_v24 = vld [vmem:[%s6368_s3 + $0x60] sm:$0xff]  }
  0x35   : > { %v857_v47 = vor.u32 %v856_v41, %v853_v27  ;;  %v882_v48 = vshll.u32 %v3905_v29, 16  ;;  %v830_v49 = vrot.slane %v829_v34, 4  ;;  %v862_v31 = vrot.slane %v860_v42, 5  ;;  %4610 = vmatprep.subr.bf16.mxu1 %v5212_v24  ;;  %v5216_v27 = vld [vmem:[%s6368_s3] sm:$0xff]  }
  0x36   : > { %v871_v50 = vor.u32 %v870_v45, %v867_v44  ;;  %v881_v51 = vrot.slane %v879_v15, 4  ;;  %v888_v52 = vshll.u32 %v3906_v37, 16  ;;  %v893_v53 = vshrl.u32 %v3907_v39, 16  ;;  %4611 = vmatpush3.bf16.msra.mxu1 %v5212_v24  ;;  %v3920_v28 = vld [vmem:[%s6367_s2] ss:$0 sm:$0xff]  ;;  %v5225_v24 = vld [vmem:[%s6368_s3 + $0x88] sm:$0xff]  }
  0x37   : > { %v884_v38 = vrot.slane %v882_v48, 5  ;;  %v844_v54 = vrot.slane %v843_v40, 4  ;;  %v876_v5 = vrot.slane %v874_v46, 5  ;;  %v896_v6 = vshll.u32 %v3907_v39, 16  ;;  %4612 = vmatprep.subr.bf16.mxu1 %v5213_v25 }
  0x38   : > { %4575 = vmatmul.mubr.msk.bf16.vlgmr.msra.gmra.mrb[0].mxu0 %vm474_vm2, %v3866_v30  ;;  %v902_v55 = vshll.u32 %v3908_v43, 16  ;;  %v858_v57 = vrot.slane %v857_v47, 4  ;;  %v895_v59 = vrot.slane %v893_v53, 4  ;;  %v3868_v60 = vcombine.low %v5486_v58, %v5489_v62  ;;  %v5207_v58 = vld [vmem:[%s5429_s12 + $0x38] ss:$8 sps:$4 sm:$0xff]  }
  0x39   : > { %4583 = vmatpush3.bf16.msra.mxu0 %v5504_v18  ;;  %4578 = vmatprep.mubr.msk.bf16.mxu0 %vm474_vm2, %v3867_v1  ;;  %v872_v18 = vrot.slane %v871_v50, 4  ;;  %v885_v61 = vor.u32 %v884_v38, %v881_v51  ;;  %v898_v63 = vrot.slane %v896_v6, 5  ;;  %v890_v0 = vrot.slane %v888_v52, 5  ;;  %v1072_v1 = vld [vmem:[#allocation2 + $0x1] sm:$0xff] }
  0x3a   : > { %4592 = vmatprep.subr.bf16.mxu0 %v5204_v32  ;;  %v904_v2 = vrot.slane %v902_v55, 5  ;;  %v807_v62 = vsel %vm5466_vm3, %v5535_v13, %v5532_v9  ;;  %v821_v11 = vsel %vm5466_vm3, %v5540_v21, %v5537_v14  ;;  %v835_v17 = vsel %vm5466_vm3, %v830_v49, %v5542_v22  ;;  %4613 = vmatpush3.bf16.msra.mxu1 %v5213_v25 }
  0x3b   : > { %v899_v3 = vor.u32 %v898_v63, %v895_v59  ;;  %v886_v4 = vrot.slane %v885_v61, 4  ;;  %v3911_v12 = vcombine.low %v807_v62, %v821_v11  ;;  %v849_v19 = vsel %vm5466_vm3, %v844_v54, %v848_v16  ;;  %4614 = vmatprep.subr.bf16.mxu1 %v5214_v33  ;;  %v5217_v16 = vld [vmem:[%s6368_s3 + $0x8] sm:$0xff]  }
  0x3c   : > { %v863_v9 = vsel %vm5466_vm3, %v858_v57, %v862_v31  ;;  %v877_v13 = vsel %vm5466_vm3, %v872_v18, %v876_v5  ;;  %v3912_v20 = vcombine.low %v835_v17, %v849_v19  ;;  %v5218_v5 = vld [vmem:[%s6368_s3 + $0x10] sm:$0xff]  }
  0x3d   : > { %v900_v7 = vrot.slane %v899_v3, 4  ;;  %v3913_v14 = vcombine.low %v863_v9, %v877_v13  ;;  %v891_v21 = vsel %vm5466_vm3, %v886_v4, %v890_v0  ;;  %v5680_v4 = vld [vmem:[#allocation2] sm:$0xff]  ;;  %v5222_v19 = vld [vmem:[%s6368_s3 + $0x30] sm:$0xff]   ;;  %v5223_v9 = vld [vmem:[%s6368_s3 + $0x38] sm:$0xff]  }
  0x3e   : > { %4615 = vmatpush3.bf16.msra.mxu1 %v5214_v33  ;;  %v5224_v13 = vld [vmem:[%s6368_s3 + $0x80] sm:$0xff]   ;;  %v5226_v33 = vld [vmem:[%s6368_s3 + $0x90] sm:$0xff]  }
  0x3f   : > { %v905_v22 = vsel %vm5466_vm3, %v900_v7, %v904_v2  ;;  %4616 = vmatprep.subr.bf16.mxu1 %v5215_v26  ;;  %v5219_v2 = vld [vmem:[%s6368_s3 + $0x18] sm:$0xff]  }
  0x40   : > { %4579 = vmatmul.mubr.msk.bf16.gmra.mrb[4].mxu0 %vm474_vm2, %v3868_v60  ;;  %v3914_v23 = vcombine.low %v891_v21, %v905_v22 }
  0x41   : > { %4584 = vmatprep.mubr.msk.bf16.mxu0 %vm474_vm2, %v5203_v56 }
  0x42   : > { %4617 = vmatpush3.bf16.msra.mxu1 %v5215_v26 }
  0x43   : > { %4626 = vmatprep.subr.bf16.mxu1 %v5216_v27 }
  0x48   : > { %4585 = vmatmul.mubr.msk.bf16.vlgmr.msra.gmra.mrb[0].mxu0 %vm474_vm2, %v5205_v8 }
  0x49   : > { %4593 = vmatpush3.bf16.msra.mxu0 %v5204_v32  ;;  %4588 = vmatprep.mubr.msk.bf16.mxu0 %vm474_vm2, %v5206_v10 }
  0x50   : > { %4589 = vmatmul.mubr.msk.bf16.gmra.mrb[4].mxu0 %vm474_vm2, %v5207_v58  ;;  %v5220_v58 = vld [vmem:[%s6368_s3 + $0x20] sm:$0xff]  }
  0x51   : > { %4594 = vmatprep.mubr.msk.bf16.mxu0 %vm474_vm2, %v3911_v12  ;;  %v5221_v12 = vld [vmem:[%s6368_s3 + $0x28] sm:$0xff]  }
  0x58   : > { %4595 = vmatmul.mubr.msk.bf16.vlgmr.msra.gmra.mrb[0].mxu0 %vm474_vm2, %v3912_v20 }
  0x59   : > { %4598 = vmatprep.mubr.msk.bf16.mxu0 %vm474_vm2, %v3913_v14 }
  0x60   : > { %4599 = vmatmul.mubr.msk.bf16.gmra.mrb[4].mxu0 %vm474_vm2, %v3914_v23 }
 0x12b   : > { %v4596_v29 = vpop.f32.mrb[0].mxu0 }
 0x12c   : > { %v1021_v30 = vadd.f32 %v4596_v29, %v3920_v28  ;;  %v973_v32 = vpop.f32.mrb[1].mxu0 }
 0x12d   : > { %v1019_v34 = vadd.f32 %v3920_v28, %v973_v32  ;;  %v4597_v35 = vpop.f32.mrb[2].mxu0 }
 0x12e   : > { %v5614_v36 = vmax.f32 %v1021_v30, 0.0  ;;  %v1022_v37 = vadd.f32 %v4597_v35, %v3920_v28  ;;  %v976_v39 = vpop.f32.mrb[3].mxu0  ;;  %v5227_v30 = vld [vmem:[%s6368_s3 + $0x98] sm:$0xff]   ;;  %v5229_v35 = vld [vmem:[%s6368_s3 + $0xa8] sm:$0xff]  }
 0x12f   : > { %v5616_v40 = vmax.f32 %v1019_v34, 0.0  ;;  %v1020_v41 = vadd.f32 %v3920_v28, %v976_v39  ;;  %v5228_v34 = vld [vmem:[%s6368_s3 + $0xa0] sm:$0xff]   ;;  %v5231_v39 = vld [vmem:[%s6368_s3 + $0xb8] sm:$0xff]  }
 0x130   : > { %1038 = vst [vmem:[#allocation2 + $0x31] sm:$0xff] %v5614_v36  ;;  %v5619_v42 = vmax.f32 %v1022_v37, 0.0  ;;  %v5230_v37 = vld [vmem:[%s6368_s3 + $0xb0] sm:$0xff]  }
 0x131   : > { %1036 = vst [vmem:[#allocation2 + $0x11] sm:$0xff] %v5616_v40  ;;  %v5622_v43 = vmax.f32 %v1020_v41, 0.0  ;;  %v1080_v44 = vpack.c.bf16 %v5616_v40, %v1072_v1  ;;  %v5232_v1 = vld [vmem:[%s6368_s3 + $0xc0] sm:$0xff]  }
 0x132   : > { %1039 = vst [vmem:[#allocation2 + $0x41] sm:$0xff] %v5619_v42  ;;  %v1636_v45 = vpack.c.bf16 %v5619_v42, %v5614_v36 }
 0x133   : > { %1037 = vst [vmem:[#allocation2 + $0x21] sm:$0xff] %v5622_v43  ;;  %v4600_v46 = vpop.f32.mrb[4].mxu0  ;;  %4618 = vmatprep.mubr.bf16.mxu1 %v1080_v44  ;;  %v5631_v15 = vpack.c.bf16 %v5614_v36, %v5622_v43  ;;  %v1635_v47 = vpack.c.bf16 %v5622_v43, %v5616_v40  ;;  %v5233_v44 = vld [vmem:[%s6368_s3 + $0xc8] sm:$0xff]   ;;  %v5247_v40 = vld [vmem:[%s6368_s3 + $0x138] sm:$0xff]   ;;  %v5248_v43 = vld [vmem:[%s6368_s3 + $0x140] sm:$0xff]  }
 0x134   : > { %v1025_v48 = vadd.f32 %v4600_v46, %v3920_v28  ;;  %v989_v49 = vpop.f32.mrb[5].mxu0  ;;  %v5280_v36 = vld [vmem:[%s6370_s5] sm:$0xff]  }
 0x135   : > { %v1023_v50 = vadd.f32 %v3920_v28, %v989_v49  ;;  %v4601_v51 = vpop.f32.mrb[6].mxu0  ;;  %4619 = vmatmul.mubr.bf16.vlgmr.msra.gmra.mrb[0].mxu1 %v5631_v15  ;;  %4842 = vmatprep.subr.bf16.mxu0 %v5280_v36 }
 0x136   : > { %v5639_v31 = vmax.f32 %v1025_v48, 0.0  ;;  %v1026_v38 = vadd.f32 %v4601_v51, %v3920_v28  ;;  %v992_v52 = vpop.f32.mrb[7].mxu0  ;;  %4627 = vmatpush3.bf16.msra.mxu1 %v5216_v27  ;;  %v1327_v27 = vld [vmem:[#allocation2 + $0x2] sm:$0xff]  ;;  %4843 = vmatpush3.bf16.msra.mxu0 %v5280_v36 }
 0x137   : > { %v5641_v53 = vmax.f32 %v1023_v50, 0.0  ;;  %v1024_v54 = vadd.f32 %v3920_v28, %v992_v52  ;;  %4628 = vmatprep.subr.bf16.mxu1 %v5217_v16  ;;  %v5658_v59 = vld [vmem:[#allocation2 + $0x32] sm:$0xff]  ;;  %v5237_v52 = vld [vmem:[%s6368_s3 + $0xe8] sm:$0xff]  }
 0x138   : > { %1042 = vst [vmem:[#allocation2 + $0x71] sm:$0xff] %v5639_v31  ;;  %v5647_v6 = vmax.f32 %v1026_v38, 0.0  ;;  %v5656_v57 = vld [vmem:[#allocation2 + $0x10] sm:$0xff]  ;;  %v5235_v50 = vld [vmem:[%s6368_s3 + $0xd8] sm:$0xff]   ;;  %v5236_v38 = vld [vmem:[%s6368_s3 + $0xe0] sm:$0xff]  }
 0x139   : > { %1040 = vst [vmem:[#allocation2 + $0x51] sm:$0xff] %v5641_v53  ;;  %v5650_v55 = vmax.f32 %v1024_v54, 0.0  ;;  %v5654_v56 = vpack.c.bf16 %v5641_v53, %v5619_v42  ;;  %v5660_v60 = vld [vmem:[#allocation2 + $0x42] sm:$0xff]  ;;  %v5678_v3 = vld [vmem:[#allocation2 + $0x12] sm:$0xff]  ;;  %v1052_v7 = vpack.c.bf16 %v5656_v57, %v5680_v4 }
 0x13a   : > { %1043 = vst [vmem:[#allocation2 + $0x81] sm:$0xff] %v5647_v6  ;;  %4629 = vmatpush3.bf16.msra.mxu1 %v5217_v16  ;;  %v5663_v18 = vld [vmem:[#allocation2 + $0x22] sm:$0xff]  ;;  %v1638_v61 = vpack.c.bf16 %v5647_v6, %v5639_v31  ;;  %v1786_v63 = vpack.c.bf16 %v5660_v60, %v5658_v59  ;;  %v5712_v21 = vld [vmem:[#allocation2 + $0x30] sm:$0xff]  ;;  %v1335_v32 = vpack.c.bf16 %v5678_v3, %v1327_v27 }
 0x13b   : > { %1041 = vst [vmem:[#allocation2 + $0x61] sm:$0xff] %v5650_v55  ;;  %4622 = vmatprep.mubr.bf16.mxu1 %v5654_v56  ;;  %4630 = vmatprep.subr.bf16.mxu1 %v5218_v5  ;;  %v5673_v0 = vpack.c.bf16 %v5639_v31, %v5650_v55  ;;  %v1637_v8 = vpack.c.bf16 %v5650_v55, %v5641_v53  ;;  %v1046_v20 = vld [vmem:[#allocation2 + $0x20] sm:$0xff]  ;;  %v5234_v16 = vld [vmem:[%s6368_s3 + $0xd0] sm:$0xff]   ;;  %v5282_v42 = vld [vmem:[%s6370_s5 + $0x8] sm:$0xff]  }
 0x13c   : > { %v1785_v10 = vpack.c.bf16 %v5663_v18, %v5678_v3  ;;  %v5715_v22 = vpack.c.bf16 %v5712_v21, %v1046_v20  ;;  %v5717_v23 = vld [vmem:[#allocation2 + $0x40] sm:$0xff]  ;;  %v5761_v41 = vpack.c.bf16 %v5658_v59, %v5663_v18  ;;  %v1485_v51 = vpack.c.bf16 %v1046_v20, %v5656_v57  ;;  %v5238_v54 = vld [vmem:[%s6368_s3 + $0xf0] sm:$0xff]   ;;  %4844 = vmatprep.subr.bf16.mxu0 %v5282_v42  ;;  %v5253_v53 = vld [vmem:[%s6368_s3 + $0x168] sm:$0xff]  }
 0x13d   : > { %4623 = vmatmul.mubr.bf16.gmra.mrb[4].mxu1 %v5673_v0  ;;  %v5240_v57 = vld [vmem:[%s6368_s3 + $0x100] sm:$0xff]   ;;  %v5284_v31 = vld [vmem:[%s6370_s5 + $0x10] sm:$0xff]   ;;  %4845 = vmatpush3.bf16.msra.mxu0 %v5282_v42  ;;  %v5286_v55 = vld [vmem:[%s6370_s5 + $0x18] sm:$0xff]  }
 0x13e   : > { %4631 = vmatpush3.bf16.msra.mxu1 %v5218_v5  ;;  %4642 = vmatprep.mubr.bf16.mxu1 %v1052_v7  ;;  %v5239_v5 = vld [vmem:[%s6368_s3 + $0xf8] sm:$0xff]   ;;  %v5241_v7 = vld [vmem:[%s6368_s3 + $0x108] sm:$0xff]   ;;  %v5244_v20 = vld [vmem:[%s6368_s3 + $0x120] sm:$0xff]  }
 0x13f   : > { %4632 = vmatprep.subr.bf16.mxu1 %v5219_v2  ;;  %v5733_v28 = vld [vmem:[#allocation2 + $0x70] sm:$0xff]  ;;  %4846 = vmatprep.subr.bf16.mxu0 %v5284_v31  ;;  %v5256_v3 = vld [vmem:[%s6368_s3 + $0x180] sm:$0xff]   ;;  %v5259_v59 = vld [vmem:[%s6368_s3 + $0x198] sm:$0xff]  }
 0x140   : > { %v5692_v62 = vld [vmem:[#allocation2 + $0x52] sm:$0xff] }
 0x141   : > { %v5710_v14 = vld [vmem:[#allocation2 + $0x50] sm:$0xff]  ;;  %v5768_v46 = vpack.c.bf16 %v5692_v62, %v5660_v60  ;;  %4847 = vmatpush3.bf16.msra.mxu0 %v5284_v31  ;;  %v5260_v60 = vld [vmem:[%s6368_s3 + $0x1a0] sm:$0xff]  }
 0x142   : > { %4633 = vmatpush3.bf16.msra.mxu1 %v5219_v2  ;;  %v5694_v11 = vld [vmem:[#allocation2 + $0x62] sm:$0xff]  ;;  %v5724_v25 = vpack.c.bf16 %v5710_v14, %v5717_v23  ;;  %v5775_v48 = vld [vmem:[#allocation2 + $0x72] sm:$0xff]  ;;  %v1486_v2 = vpack.c.bf16 %v5717_v23, %v5712_v21  ;;  %4848 = vmatprep.subr.bf16.mxu0 %v5286_v55 }
 0x143   : > { %4634 = vmatprep.subr.bf16.mxu1 %v5220_v58  ;;  %v1787_v17 = vpack.c.bf16 %v5694_v11, %v5692_v62  ;;  %v5731_v26 = vld [vmem:[#allocation2 + $0x60] sm:$0xff]  ;;  %v5779_v49 = vpack.c.bf16 %v5775_v48, %v5694_v11  ;;  %v5246_v21 = vld [vmem:[%s6368_s3 + $0x130] sm:$0xff]   ;;  %v5263_v11 = vld [vmem:[%s6368_s3 + $0x1b8] sm:$0xff]  }
 0x144   : > { %v5737_v29 = vpack.c.bf16 %v5733_v28, %v5731_v26  ;;  %v5250_v23 = vld [vmem:[%s6368_s3 + $0x150] sm:$0xff]  }
 0x145   : > { %v5254_v18 = vld [vmem:[%s6368_s3 + $0x170] sm:$0xff]   ;;  %4849 = vmatpush3.bf16.msra.mxu0 %v5286_v55 }
 0x146   : > { %4635 = vmatpush3.bf16.msra.mxu1 %v5220_v58  ;;  %v1487_v58 = vpack.c.bf16 %v5731_v26, %v5710_v14  ;;  %v5245_v14 = vld [vmem:[%s6368_s3 + $0x128] sm:$0xff]   ;;  %v5262_v62 = vld [vmem:[%s6368_s3 + $0x1b0] sm:$0xff]  }
 0x147   : > { %4636 = vmatprep.subr.bf16.mxu1 %v5221_v12  ;;  %v5266_v27 = vld [vmem:[%s6368_s3 + $0x1d0] sm:$0xff]  }
 0x14a   : > { %4637 = vmatpush3.bf16.msra.mxu1 %v5221_v12  ;;  %v5242_v12 = vld [vmem:[%s6368_s3 + $0x110] sm:$0xff]  }
 0x14b   : > { %4638 = vmatprep.subr.bf16.mxu1 %v5222_v19 }
 0x14e   : > { %4639 = vmatpush3.bf16.msra.mxu1 %v5222_v19  ;;  %v5811_v19 = vld [vmem:[#allocation2 + $0x80] sm:$0xff] }
 0x14f   : > { %4640 = vmatprep.subr.bf16.mxu1 %v5223_v9 }
 0x152   : > { %4641 = vmatpush3.bf16.msra.mxu1 %v5223_v9  ;;  %v1488_v9 = vpack.c.bf16 %v5811_v19, %v5733_v28  ;;  %v1939_v28 = vpack.c.bf16 %v5680_v4, %v5811_v19  ;;  %v4121_v19 = vld [vmem:[%s6369_s4] ss:$0 sm:$0xff] }
 0x153   : > { %4650 = vmatprep.subr.bf16.mxu1 %v5224_v13 }
 0x155   : > { %4643 = vmatmul.mubr.bf16.vlgmr.msra.gmra.mrb[0].mxu1 %v5715_v22 }
 0x156   : > { %4646 = vmatprep.mubr.bf16.mxu1 %v5724_v25  ;;  %4651 = vmatpush3.bf16.msra.mxu1 %v5224_v13  ;;  %v5243_v13 = vld [vmem:[%s6368_s3 + $0x118] sm:$0xff]  }
 0x157   : > { %4652 = vmatprep.subr.bf16.mxu1 %v5225_v24 }
 0x15a   : > { %4653 = vmatpush3.bf16.msra.mxu1 %v5225_v24  ;;  %v5251_v24 = vld [vmem:[%s6368_s3 + $0x158] sm:$0xff]  }
 0x15b   : > { %4654 = vmatprep.subr.bf16.mxu1 %v5226_v33 }
 0x15d   : > { %4647 = vmatmul.mubr.bf16.gmra.mrb[4].mxu1 %v5737_v29 }
 0x15e   : > { %4655 = vmatpush3.bf16.msra.mxu1 %v5226_v33  ;;  %4666 = vmatprep.mubr.bf16.mxu1 %v1335_v32  ;;  %v5896_v33 = vld [vmem:[#allocation2 + $0x82] sm:$0xff]  ;;  %v5270_v32 = vld [vmem:[%s6368_s3 + $0x1f0] sm:$0xff]  }
 0x15f   : > { %4656 = vmatprep.subr.bf16.mxu1 %v5227_v30  ;;  %v1788_v26 = vpack.c.bf16 %v5896_v33, %v5775_v48  ;;  %v5283_v48 = vld [vmem:[%s6370_s5 + $0x48] sm:$0xff]  }
 0x162   : > { %4657 = vmatpush3.bf16.msra.mxu1 %v5227_v30  ;;  %v5267_v30 = vld [vmem:[%s6368_s3 + $0x1d8] sm:$0xff]  }
 0x163   : > { %4658 = vmatprep.subr.bf16.mxu1 %v5228_v34 }
 0x166   : > { %4659 = vmatpush3.bf16.msra.mxu1 %v5228_v34  ;;  %v5272_v34 = vld [vmem:[%s6368_s3 + $0x200] sm:$0xff]  }
 0x167   : > { %4660 = vmatprep.subr.bf16.mxu1 %v5229_v35 }
 0x16a   : > { %4661 = vmatpush3.bf16.msra.mxu1 %v5229_v35  ;;  %v5273_v35 = vld [vmem:[%s6368_s3 + $0x208] sm:$0xff]  }
 0x16b   : > { %4662 = vmatprep.subr.bf16.mxu1 %v5230_v37 }
 0x16e   : > { %4663 = vmatpush3.bf16.msra.mxu1 %v5230_v37  ;;  %v5274_v37 = vld [vmem:[%s6368_s3 + $0x210] sm:$0xff]  }
 0x16f   : > { %4664 = vmatprep.subr.bf16.mxu1 %v5231_v39 }
 0x172   : > { %4665 = vmatpush3.bf16.msra.mxu1 %v5231_v39  ;;  %v2085_v39 = vld [vmem:[#allocation2 + $0x91] sm:$0xff] }
 0x173   : > { %4674 = vmatprep.subr.bf16.mxu1 %v5232_v1 }
 0x175   : > { %4667 = vmatmul.mubr.bf16.vlgmr.msra.gmra.mrb[0].mxu1 %v5761_v41 }
 0x176   : > { %4670 = vmatprep.mubr.bf16.mxu1 %v5768_v46  ;;  %4675 = vmatpush3.bf16.msra.mxu1 %v5232_v1  ;;  %v2089_v1 = vpack.c.bf16 %v2085_v39, %v5647_v6  ;;  %v5277_v6 = vld [vmem:[%s6368_s3 + $0x228] sm:$0xff]  }
 0x177   : > { %4676 = vmatprep.subr.bf16.mxu1 %v5233_v44 }
 0x17a   : > { %4677 = vmatpush3.bf16.msra.mxu1 %v5233_v44  ;;  %v5275_v44 = vld [vmem:[%s6368_s3 + $0x218] sm:$0xff]  }
 0x17b   : > { %4678 = vmatprep.subr.bf16.mxu1 %v5234_v16 }
 0x17d   : > { %4671 = vmatmul.mubr.bf16.gmra.mrb[4].mxu1 %v5779_v49 }
 0x17e   : > { %4679 = vmatpush3.bf16.msra.mxu1 %v5234_v16  ;;  %4690 = vmatprep.mubr.bf16.mxu1 %v1485_v51  ;;  %v5281_v16 = vld [vmem:[%s6370_s5 + $0x40] sm:$0xff]   ;;  %v2235_v51 = vld [vmem:[#allocation2 + $0x92] sm:$0xff] }
 0x17f   : > { %4680 = vmatprep.subr.bf16.mxu1 %v5235_v50 }
 0x182   : > { %4681 = vmatpush3.bf16.msra.mxu1 %v5235_v50  ;;  %v5285_v50 = vld [vmem:[%s6370_s5 + $0x50] sm:$0xff]  }
 0x183   : > { %4682 = vmatprep.subr.bf16.mxu1 %v5236_v38 }
 0x186   : > { %4683 = vmatpush3.bf16.msra.mxu1 %v5236_v38  ;;  %v2239_v38 = vpack.c.bf16 %v2235_v51, %v5896_v33 }
 0x187   : > { %4684 = vmatprep.subr.bf16.mxu1 %v5237_v52 }
 0x18a   : > { %4685 = vmatpush3.bf16.msra.mxu1 %v5237_v52  ;;  %v5287_v52 = vld [vmem:[%s6370_s5 + $0x58] sm:$0xff]  }
 0x18b   : > { %4686 = vmatprep.subr.bf16.mxu1 %v5238_v54 }
 0x18e   : > { %4687 = vmatpush3.bf16.msra.mxu1 %v5238_v54  ;;  %v5288_v54 = vld [vmem:[%s6370_s5 + $0x20] sm:$0xff]  }
 0x18f   : > { %4688 = vmatprep.subr.bf16.mxu1 %v5239_v5  ;;  %4850 = vmatprep.subr.bf16.mxu0 %v5288_v54 }
 0x190   : > { %4851 = vmatpush3.bf16.msra.mxu0 %v5288_v54 }
 0x192   : > { %4689 = vmatpush3.bf16.msra.mxu1 %v5239_v5  ;;  %v5293_v5 = vld [vmem:[%s6370_s5 + $0x70] sm:$0xff]  }
 0x193   : > { %4698 = vmatprep.subr.bf16.mxu1 %v5240_v57 }
 0x195   : > { %4691 = vmatmul.mubr.bf16.vlgmr.msra.gmra.mrb[0].mxu1 %v1486_v2  ;;  %v5295_v2 = vld [vmem:[%s6370_s5 + $0x78] sm:$0xff]  }
 0x196   : > { %4694 = vmatprep.mubr.bf16.mxu1 %v1487_v58  ;;  %4699 = vmatpush3.bf16.msra.mxu1 %v5240_v57  ;;  %v5290_v57 = vld [vmem:[%s6370_s5 + $0x28] sm:$0xff]   ;;  %v5294_v58 = vld [vmem:[%s6370_s5 + $0x38] sm:$0xff]  }
 0x197   : > { %4700 = vmatprep.subr.bf16.mxu1 %v5241_v7  ;;  %4852 = vmatprep.subr.bf16.mxu0 %v5290_v57 }
 0x198   : > { %4853 = vmatpush3.bf16.msra.mxu0 %v5290_v57  ;;  %v5300_v57 = vld [vmem:[%s6370_s5 + $0xa0] sm:$0xff]  }
 0x19a   : > { %4701 = vmatpush3.bf16.msra.mxu1 %v5241_v7  ;;  %v5292_v7 = vld [vmem:[%s6370_s5 + $0x30] sm:$0xff]  }
 0x19b   : > { %4702 = vmatprep.subr.bf16.mxu1 %v5242_v12  ;;  %4854 = vmatprep.subr.bf16.mxu0 %v5292_v7 }
 0x19c   : > { %4855 = vmatpush3.bf16.msra.mxu0 %v5292_v7  ;;  %v5302_v7 = vld [vmem:[%s6370_s5 + $0xb0] sm:$0xff]  }
 0x19d   : > { %4695 = vmatmul.mubr.bf16.gmra.mrb[4].mxu1 %v1488_v9  ;;  %4856 = vmatprep.subr.bf16.mxu0 %v5294_v58 }
 0x19e   : > { %4703 = vmatpush3.bf16.msra.mxu1 %v5242_v12  ;;  %4714 = vmatprep.mubr.bf16.mxu1 %v1635_v47  ;;  %v5249_v47 = vld [vmem:[%s6368_s3 + $0x148] sm:$0xff]   ;;  %v5296_v12 = vld [vmem:[%s6370_s5 + $0x80] sm:$0xff]  }
 0x19f   : > { %4704 = vmatprep.subr.bf16.mxu1 %v5243_v13 }
 0x1a0   : > { %4857 = vmatpush3.bf16.msra.mxu0 %v5294_v58  ;;  %v5303_v58 = vld [vmem:[%s6370_s5 + $0xb8] sm:$0xff]  }
 0x1a1   : > { %4866 = vmatprep.subr.bf16.mxu0 %v5296_v12 }
 0x1a2   : > { %4705 = vmatpush3.bf16.msra.mxu1 %v5243_v13 }
 0x1a3   : > { %4706 = vmatprep.subr.bf16.mxu1 %v5244_v20 }
 0x1a6   : > { %4707 = vmatpush3.bf16.msra.mxu1 %v5244_v20 }
 0x1a7   : > { %4708 = vmatprep.subr.bf16.mxu1 %v5245_v14 }
 0x1aa   : > { %4709 = vmatpush3.bf16.msra.mxu1 %v5245_v14 }
 0x1ab   : > { %4710 = vmatprep.subr.bf16.mxu1 %v5246_v21 }
 0x1ae   : > { %4711 = vmatpush3.bf16.msra.mxu1 %v5246_v21 }
 0x1af   : > { %4712 = vmatprep.subr.bf16.mxu1 %v5247_v40 }
 0x1b2   : > { %4713 = vmatpush3.bf16.msra.mxu1 %v5247_v40 }
 0x1b3   : > { %4722 = vmatprep.subr.bf16.mxu1 %v5248_v43 }
 0x1b5   : > { %4715 = vmatmul.mubr.bf16.vlgmr.msra.gmra.mrb[0].mxu1 %v1636_v45  ;;  %v5252_v45 = vld [vmem:[%s6368_s3 + $0x160] sm:$0xff]  }
 0x1b6   : > { %4718 = vmatprep.mubr.bf16.mxu1 %v1637_v8  ;;  %4723 = vmatpush3.bf16.msra.mxu1 %v5248_v43  ;;  %v5257_v8 = vld [vmem:[%s6368_s3 + $0x188] sm:$0xff]  }
 0x1b7   : > { %4724 = vmatprep.subr.bf16.mxu1 %v5249_v47 }
 0x1ba   : > { %4725 = vmatpush3.bf16.msra.mxu1 %v5249_v47 }
 0x1bb   : > { %4726 = vmatprep.subr.bf16.mxu1 %v5250_v23 }
 0x1bd   : > { %4719 = vmatmul.mubr.bf16.gmra.mrb[4].mxu1 %v1638_v61  ;;  %v5255_v61 = vld [vmem:[%s6368_s3 + $0x178] sm:$0xff]  }
 0x1be   : > { %4727 = vmatpush3.bf16.msra.mxu1 %v5250_v23  ;;  %4738 = vmatprep.mubr.bf16.mxu1 %v1785_v10  ;;  %v5258_v10 = vld [vmem:[%s6368_s3 + $0x190] sm:$0xff]   ;;  %v2438_v23 = vld [vmem:[#allocation3 + $0x1] sm:$0xff] }
 0x1bf   : > { %4728 = vmatprep.subr.bf16.mxu1 %v5251_v24 }
 0x1c2   : > { %4729 = vmatpush3.bf16.msra.mxu1 %v5251_v24 }
 0x1c3   : > { %4730 = vmatprep.subr.bf16.mxu1 %v5252_v45 }
 0x1c6   : > { %4731 = vmatpush3.bf16.msra.mxu1 %v5252_v45 }
 0x1c7   : > { %4732 = vmatprep.subr.bf16.mxu1 %v5253_v53 }
 0x1ca   : > { %4733 = vmatpush3.bf16.msra.mxu1 %v5253_v53 }
 0x1cb   : > { %4734 = vmatprep.subr.bf16.mxu1 %v5254_v18 }
 0x1ce   : > { %4735 = vmatpush3.bf16.msra.mxu1 %v5254_v18 }
 0x1cf   : > { %4736 = vmatprep.subr.bf16.mxu1 %v5255_v61 }
 0x1d2   : > { %4737 = vmatpush3.bf16.msra.mxu1 %v5255_v61 }
 0x1d3   : > { %4746 = vmatprep.subr.bf16.mxu1 %v5256_v3 }
 0x1d5   : > { %4739 = vmatmul.mubr.bf16.vlgmr.msra.gmra.mrb[0].mxu1 %v1786_v63  ;;  %v5261_v63 = vld [vmem:[%s6368_s3 + $0x1a8] sm:$0xff]  }
 0x1d6   : > { %4742 = vmatprep.mubr.bf16.mxu1 %v1787_v17  ;;  %4747 = vmatpush3.bf16.msra.mxu1 %v5256_v3  ;;  %v5264_v17 = vld [vmem:[%s6368_s3 + $0x1c0] sm:$0xff]  }
 0x1d7   : > { %4748 = vmatprep.subr.bf16.mxu1 %v5257_v8 }
 0x1da   : > { %4749 = vmatpush3.bf16.msra.mxu1 %v5257_v8 }
 0x1db   : > { %4750 = vmatprep.subr.bf16.mxu1 %v5258_v10 }
 0x1dd   : > { %4743 = vmatmul.mubr.bf16.gmra.mrb[4].mxu1 %v1788_v26 }
 0x1de   : > { %4751 = vmatpush3.bf16.msra.mxu1 %v5258_v10  ;;  %4762 = vmatprep.mubr.bf16.mxu1 %v5715_v22  ;;  %v5265_v22 = vld [vmem:[%s6368_s3 + $0x1c8] sm:$0xff]  }
 0x1df   : > { %4752 = vmatprep.subr.bf16.mxu1 %v5259_v59 }
 0x1e2   : > { %4753 = vmatpush3.bf16.msra.mxu1 %v5259_v59 }
 0x1e3   : > { %4754 = vmatprep.subr.bf16.mxu1 %v5260_v60 }
 0x1e6   : > { %4755 = vmatpush3.bf16.msra.mxu1 %v5260_v60 }
 0x1e7   : > { %4756 = vmatprep.subr.bf16.mxu1 %v5261_v63 }
 0x1ea   : > { %4757 = vmatpush3.bf16.msra.mxu1 %v5261_v63 }
 0x1eb   : > { %4758 = vmatprep.subr.bf16.mxu1 %v5262_v62 }
 0x1ee   : > { %4759 = vmatpush3.bf16.msra.mxu1 %v5262_v62 }
 0x1ef   : > { %4760 = vmatprep.subr.bf16.mxu1 %v5263_v11 }
 0x1f2   : > { %4761 = vmatpush3.bf16.msra.mxu1 %v5263_v11 }
 0x1f3   : > { %4770 = vmatprep.subr.bf16.mxu1 %v5264_v17 }
 0x1f5   : > { %4763 = vmatmul.mubr.bf16.vlgmr.msra.gmra.mrb[0].mxu1 %v5724_v25  ;;  %v5268_v25 = vld [vmem:[%s6368_s3 + $0x1e0] sm:$0xff]  }
 0x1f6   : > { %4766 = vmatprep.mubr.bf16.mxu1 %v5737_v29  ;;  %4771 = vmatpush3.bf16.msra.mxu1 %v5264_v17  ;;  %v5269_v29 = vld [vmem:[%s6368_s3 + $0x1e8] sm:$0xff]  }
 0x1f7   : > { %4772 = vmatprep.subr.bf16.mxu1 %v5265_v22 }
 0x1fa   : > { %4773 = vmatpush3.bf16.msra.mxu1 %v5265_v22 }
 0x1fb   : > { %4774 = vmatprep.subr.bf16.mxu1 %v5266_v27 }
 0x1fd   : > { %4767 = vmatmul.mubr.bf16.gmra.mrb[4].mxu1 %v1939_v28 }
 0x1fe   : > { %4775 = vmatpush3.bf16.msra.mxu1 %v5266_v27  ;;  %4786 = vmatprep.mubr.bf16.mxu1 %v5631_v15  ;;  %v5271_v15 = vld [vmem:[%s6368_s3 + $0x1f8] sm:$0xff]  }
 0x1ff   : > { %4776 = vmatprep.subr.bf16.mxu1 %v5267_v30 }
 0x202   : > { %4777 = vmatpush3.bf16.msra.mxu1 %v5267_v30 }
 0x203   : > { %4778 = vmatprep.subr.bf16.mxu1 %v5268_v25 }
 0x206   : > { %4779 = vmatpush3.bf16.msra.mxu1 %v5268_v25 }
 0x207   : > { %4780 = vmatprep.subr.bf16.mxu1 %v5269_v29 }
 0x20a   : > { %4781 = vmatpush3.bf16.msra.mxu1 %v5269_v29 }
 0x20b   : > { %4782 = vmatprep.subr.bf16.mxu1 %v5270_v32 }
 0x20e   : > { %4783 = vmatpush3.bf16.msra.mxu1 %v5270_v32 }
 0x20f   : > { %4784 = vmatprep.subr.bf16.mxu1 %v5271_v15 }
 0x212   : > { %4785 = vmatpush3.bf16.msra.mxu1 %v5271_v15 }
 0x213   : > { %4794 = vmatprep.subr.bf16.mxu1 %v5272_v34 }
 0x215   : > { %4787 = vmatmul.mubr.bf16.vlgmr.msra.gmra.mrb[0].mxu1 %v5654_v56  ;;  %v5276_v56 = vld [vmem:[%s6368_s3 + $0x220] sm:$0xff]  }
 0x216   : > { %4790 = vmatprep.mubr.bf16.mxu1 %v5673_v0  ;;  %4795 = vmatpush3.bf16.msra.mxu1 %v5272_v34  ;;  %v5278_v0 = vld [vmem:[%s6368_s3 + $0x230] sm:$0xff]  }
 0x217   : > { %4796 = vmatprep.subr.bf16.mxu1 %v5273_v35 }
 0x21a   : > { %4797 = vmatpush3.bf16.msra.mxu1 %v5273_v35 }
 0x21b   : > { %4798 = vmatprep.subr.bf16.mxu1 %v5274_v37 }
 0x21d   : > { %4791 = vmatmul.mubr.bf16.gmra.mrb[4].mxu1 %v2089_v1 }
 0x21e   : > { %4799 = vmatpush3.bf16.msra.mxu1 %v5274_v37  ;;  %4810 = vmatprep.mubr.bf16.mxu1 %v5761_v41  ;;  %v5279_v41 = vld [vmem:[%s6368_s3 + $0x238] sm:$0xff]   ;;  %v5297_v37 = vld [vmem:[%s6370_s5 + $0x88] sm:$0xff]  }
 0x21f   : > { %4800 = vmatprep.subr.bf16.mxu1 %v5275_v44 }
 0x222   : > { %4801 = vmatpush3.bf16.msra.mxu1 %v5275_v44 }
 0x223   : > { %4802 = vmatprep.subr.bf16.mxu1 %v5276_v56 }
 0x226   : > { %4803 = vmatpush3.bf16.msra.mxu1 %v5276_v56 }
 0x227   : > { %4804 = vmatprep.subr.bf16.mxu1 %v5277_v6 }
 0x22a   : > { %4805 = vmatpush3.bf16.msra.mxu1 %v5277_v6  ;;  %v5298_v6 = vld [vmem:[%s6370_s5 + $0x90] sm:$0xff]  }
 0x22b   : > { %4806 = vmatprep.subr.bf16.mxu1 %v5278_v0 }
 0x22e   : > { %4807 = vmatpush3.bf16.msra.mxu1 %v5278_v0 }
 0x22f   : > { %4808 = vmatprep.subr.bf16.mxu1 %v5279_v41 }
 0x232   : > { %4809 = vmatpush3.bf16.msra.mxu1 %v5279_v41 }
 0x233   : > { %4818 = vmatprep.subr.bf16.mxu1 %v5281_v16 }
 0x235   : > { %4811 = vmatmul.mubr.bf16.vlgmr.msra.gmra.mrb[0].mxu1 %v5768_v46  ;;  %v5289_v46 = vld [vmem:[%s6370_s5 + $0x60] sm:$0xff]  }
 0x236   : > { %4814 = vmatprep.mubr.bf16.mxu1 %v5779_v49  ;;  %4819 = vmatpush3.bf16.msra.mxu1 %v5281_v16  ;;  %v5291_v49 = vld [vmem:[%s6370_s5 + $0x68] sm:$0xff]  }
 0x237   : > { %4820 = vmatprep.subr.bf16.mxu1 %v5283_v48 }
 0x23a   : > { %4821 = vmatpush3.bf16.msra.mxu1 %v5283_v48  ;;  %v2693_v48 = vld [vmem:[#allocation3 + $0x2] sm:$0xff] }
 0x23b   : > { %4822 = vmatprep.subr.bf16.mxu1 %v5285_v50 }
 0x23d   : > { %4815 = vmatmul.mubr.bf16.gmra.mrb[4].mxu1 %v2239_v38 }
 0x23e   : > { %4823 = vmatpush3.bf16.msra.mxu1 %v5285_v50 }
 0x23f   : > { %4824 = vmatprep.subr.bf16.mxu1 %v5287_v52 }
 0x242   : > { %4825 = vmatpush3.bf16.msra.mxu1 %v5287_v52 }
 0x243   : > { %4826 = vmatprep.subr.bf16.mxu1 %v5289_v46 }
 0x246   : > { %4827 = vmatpush3.bf16.msra.mxu1 %v5289_v46  ;;  %v5299_v46 = vld [vmem:[%s6370_s5 + $0x98] sm:$0xff]  }
 0x247   : > { %4828 = vmatprep.subr.bf16.mxu1 %v5291_v49 }
 0x24a   : > { %4829 = vmatpush3.bf16.msra.mxu1 %v5291_v49 }
 0x24b   : > { %4830 = vmatprep.subr.bf16.mxu1 %v5293_v5 }
 0x24e   : > { %4831 = vmatpush3.bf16.msra.mxu1 %v5293_v5 }
 0x24f   : > { %4832 = vmatprep.subr.bf16.mxu1 %v5295_v2 }
 0x252   : > { %4833 = vmatpush3.bf16.msra.mxu1 %v5295_v2  ;;  %v5301_v2 = vld [vmem:[%s6370_s5 + $0xa8] sm:$0xff]  }
 0x308   : > { %v4812_v9 = vpop.f32.mrb[0].mxu1 }
 0x309   : > { %v2387_v13 = vadd.f32 %v4812_v9, %v4121_v19  ;;  %v2339_v20 = vpop.f32.mrb[1].mxu1  ;;  %v5305_v9 = vld [vmem:[%s6370_s5 + $0xc8] sm:$0xff]  }
 0x30a   : > { %v2385_v14 = vadd.f32 %v4121_v19, %v2339_v20  ;;  %v4813_v21 = vpop.f32.mrb[2].mxu1  ;;  %v5306_v20 = vld [vmem:[%s6370_s5 + $0xd0] sm:$0xff]  }
 0x30b   : > { %v6018_v40 = vmax.f32 %v2387_v13, 0.0  ;;  %v2388_v43 = vadd.f32 %v4813_v21, %v4121_v19  ;;  %v2342_v47 = vpop.f32.mrb[3].mxu1 }
 0x30c   : > { %v6020_v24 = vmax.f32 %v2385_v14, 0.0  ;;  %v2386_v36 = vadd.f32 %v4121_v19, %v2342_v47 }
 0x30d   : > { %2404 = vst [vmem:[#allocation3 + $0x31] sm:$0xff] %v6018_v40  ;;  %v6023_v42 = vmax.f32 %v2388_v43, 0.0  ;;  %v5307_v43 = vld [vmem:[%s6370_s5 + $0xd8] sm:$0xff]  }
 0x30e   : > { %2402 = vst [vmem:[#allocation3 + $0x11] sm:$0xff] %v6020_v24  ;;  %v6026_v45 = vmax.f32 %v2386_v36, 0.0  ;;  %v2446_v31 = vpack.c.bf16 %v6020_v24, %v2438_v23  ;;  %v5308_v23 = vld [vmem:[%s6370_s5 + $0xe0] sm:$0xff]   ;;  %v5309_v36 = vld [vmem:[%s6370_s5 + $0xe8] sm:$0xff]  }
 0x30f   : > { %2405 = vst [vmem:[#allocation3 + $0x41] sm:$0xff] %v6023_v42  ;;  %v3002_v53 = vpack.c.bf16 %v6023_v42, %v6018_v40 }
 0x310   : > { %2403 = vst [vmem:[#allocation3 + $0x21] sm:$0xff] %v6026_v45  ;;  %v4816_v55 = vpop.f32.mrb[4].mxu1  ;;  %4834 = vmatprep.mubr.bf16.mxu1 %v2446_v31  ;;  %v6035_v18 = vpack.c.bf16 %v6018_v40, %v6026_v45  ;;  %v3001_v61 = vpack.c.bf16 %v6026_v45, %v6020_v24  ;;  %v5310_v31 = vld [vmem:[%s6370_s5 + $0xf0] sm:$0xff]   ;;  %v5319_v24 = vld [vmem:[%s6370_s5 + $0x138] sm:$0xff]   ;;  %v5320_v45 = vld [vmem:[%s6370_s5 + $0x140] sm:$0xff]  }
 0x311   : > { %v2391_v3 = vadd.f32 %v4816_v55, %v4121_v19  ;;  %v2355_v8 = vpop.f32.mrb[5].mxu1  ;;  %v5311_v55 = vld [vmem:[%s6370_s5 + $0xf8] sm:$0xff]   ;;  %v5324_v40 = vld [vmem:[%s6370_s5 + $0x160] sm:$0xff]  }
 0x312   : > { %v2389_v10 = vadd.f32 %v4121_v19, %v2355_v8  ;;  %v4817_v33 = vpop.f32.mrb[6].mxu1  ;;  %4835 = vmatmul.mubr.bf16.vlgmr.msra.gmra.mrb[8].mxu1 %v6035_v18 }
 0x313   : > { %v6040_v26 = vmax.f32 %v2391_v3, 0.0  ;;  %v2392_v59 = vadd.f32 %v4817_v33, %v4121_v19  ;;  %v2358_v60 = vpop.f32.mrb[7].mxu1  ;;  %v5312_v3 = vld [vmem:[%s6370_s5 + $0x100] sm:$0xff]  }
 0x314   : > { %v6042_v63 = vmax.f32 %v2389_v10, 0.0  ;;  %v2390_v62 = vadd.f32 %v4121_v19, %v2358_v60  ;;  %v6058_v30 = vld [vmem:[#allocation3 + $0x32] sm:$0xff]  ;;  %v5313_v10 = vld [vmem:[%s6370_s5 + $0x108] sm:$0xff]  }
 0x315   : > { %2408 = vst [vmem:[#allocation3 + $0x71] sm:$0xff] %v6040_v26  ;;  %v6045_v11 = vmax.f32 %v2392_v59, 0.0  ;;  %v6047_v17 = vld [vmem:[#allocation3 + $0x10] sm:$0xff] }
 0x316   : > { %2406 = vst [vmem:[#allocation3 + $0x51] sm:$0xff] %v6042_v63  ;;  %v6050_v22 = vmax.f32 %v2390_v62, 0.0  ;;  %v2418_v27 = vpack.c.bf16 %v6047_v17, %v5680_v4  ;;  %v6056_v28 = vpack.c.bf16 %v6042_v63, %v6023_v42  ;;  %v6060_v25 = vld [vmem:[#allocation3 + $0x42] sm:$0xff]  ;;  %v6065_v32 = vld [vmem:[#allocation3 + $0x30] sm:$0xff] }
 0x317   : > { %2409 = vst [vmem:[#allocation3 + $0x81] sm:$0xff] %v6045_v11  ;;  %v6063_v29 = vld [vmem:[#allocation3 + $0x20] sm:$0xff]  ;;  %v3004_v34 = vpack.c.bf16 %v6045_v11, %v6040_v26  ;;  %v3152_v4 = vpack.c.bf16 %v6060_v25, %v6058_v30  ;;  %v6086_v1 = vld [vmem:[#allocation3 + $0x12] sm:$0xff]  ;;  %v5325_v42 = vld [vmem:[%s6370_s5 + $0x168] sm:$0xff]  }
 0x318   : > { %v6067_v15 = vld [vmem:[#allocation3 + $0x22] sm:$0xff]  ;;  %2407 = vst [vmem:[#allocation3 + $0x61] sm:$0xff] %v6050_v22  ;;  %4858 = vmatprep.mubr.bf16.mxu0 %v2418_v27  ;;  %v6076_v35 = vpack.c.bf16 %v6065_v32, %v6063_v29  ;;  %4838 = vmatprep.mubr.bf16.mxu1 %v6056_v28  ;;  %v6084_v39 = vpack.c.bf16 %v6040_v26, %v6050_v22  ;;  %v5314_v59 = vld [vmem:[%s6370_s5 + $0x110] sm:$0xff]   ;;  %v5327_v26 = vld [vmem:[%s6370_s5 + $0x178] sm:$0xff]  }
 0x319   : > { %v3003_v44 = vpack.c.bf16 %v6050_v22, %v6042_v63  ;;  %v3151_v56 = vpack.c.bf16 %v6067_v15, %v6086_v1  ;;  %v6097_v0 = vld [vmem:[#allocation3 + $0x40] sm:$0xff]  ;;  %v2701_v54 = vpack.c.bf16 %v6086_v1, %v2693_v48  ;;  %v6142_v19 = vpack.c.bf16 %v6058_v30, %v6067_v15  ;;  %v5329_v22 = vld [vmem:[%s6370_s5 + $0x188] sm:$0xff]   ;;  %v5330_v15 = vld [vmem:[%s6370_s5 + $0x190] sm:$0xff]  }
 0x31a   : > { %4859 = vmatmul.mubr.bf16.vlgmr.msra.gmra.mrb[8].mxu0 %v6076_v35  ;;  %4839 = vmatmul.mubr.bf16.gmra.mrb[12].mxu1 %v6084_v39  ;;  %v2851_v47 = vpack.c.bf16 %v6063_v29, %v6047_v17  ;;  %v2852_v8 = vpack.c.bf16 %v6097_v0, %v6065_v32  ;;  %v5315_v17 = vld [vmem:[%s6370_s5 + $0x118] sm:$0xff]   ;;  %v5316_v27 = vld [vmem:[%s6370_s5 + $0x120] sm:$0xff]   ;;  %v5317_v29 = vld [vmem:[%s6370_s5 + $0x128] sm:$0xff]  }
 0x31b   : > { %4867 = vmatpush3.bf16.msra.mxu0 %v5296_v12  ;;  %v5304_v12 = vld [vmem:[%s6370_s5 + $0xc0] sm:$0xff]   ;;  %v5318_v32 = vld [vmem:[%s6370_s5 + $0x130] sm:$0xff]   ;;  %v5331_v30 = vld [vmem:[%s6370_s5 + $0x198] sm:$0xff]  }
 0x31c   : > { %4868 = vmatprep.subr.bf16.mxu0 %v5297_v37  ;;  %v6107_v51 = vld [vmem:[#allocation3 + $0x70] sm:$0xff]  ;;  %v5328_v63 = vld [vmem:[%s6370_s5 + $0x180] sm:$0xff]  }
 0x31d   : > { %v6099_v41 = vld [vmem:[#allocation3 + $0x50] sm:$0xff]  ;;  %v5353_v48 = vld [vmem:[#allocation2] sm:$0xff] }
 0x31e   : > { %v6103_v16 = vpack.c.bf16 %v6099_v41, %v6097_v0  ;;  %v6119_v49 = vld [vmem:[#allocation3 + $0x52] sm:$0xff]  ;;  %v6193_v60 = vld [vmem:[#allocation3 + $0x80] sm:$0xff]  ;;  %v5337_v0 = vld [vmem:[%s6370_s5 + $0x1c8] sm:$0xff]  }
 0x31f   : > { %4869 = vmatpush3.bf16.msra.mxu0 %v5297_v37  ;;  %v6105_v50 = vld [vmem:[#allocation3 + $0x60] sm:$0xff]  ;;  %v6149_v13 = vpack.c.bf16 %v6119_v49, %v6060_v25  ;;  %v6156_v14 = vld [vmem:[#allocation3 + $0x72] sm:$0xff]  ;;  %v2854_v62 = vpack.c.bf16 %v6193_v60, %v6107_v51 }
 0x320   : > { %v6109_v38 = vld [vmem:[#allocation3 + $0x62] sm:$0xff]  ;;  %4862 = vmatprep.mubr.bf16.mxu0 %v6103_v16  ;;  %4870 = vmatprep.subr.bf16.mxu0 %v5298_v6  ;;  %v6114_v52 = vpack.c.bf16 %v6107_v51, %v6105_v50  ;;  %v2853_v33 = vpack.c.bf16 %v6105_v50, %v6099_v41  ;;  %v5322_v37 = vld [vmem:[%s6370_s5 + $0x150] sm:$0xff]   ;;  %v3305_v50 = vpack.c.bf16 %v5353_v48, %v6193_v60  ;;  %v5339_v51 = vld [vmem:[%s6370_s5 + $0x1d8] sm:$0xff]  }
 0x321   : > { %v3153_v5 = vpack.c.bf16 %v6109_v38, %v6119_v49  ;;  %v6160_v21 = vpack.c.bf16 %v6156_v14, %v6109_v38  ;;  %v5332_v25 = vld [vmem:[%s6370_s5 + $0x1a0] sm:$0xff]   ;;  %v5338_v41 = vld [vmem:[%s6370_s5 + $0x1d0] sm:$0xff]   ;;  %v5341_v38 = vld [vmem:[%s6370_s5 + $0x1e8] sm:$0xff]  }
 0x322   : > { %4863 = vmatmul.mubr.bf16.gmra.mrb[12].mxu0 %v6114_v52  ;;  %v5345_v49 = vld [vmem:[%s6370_s5 + $0x208] sm:$0xff]   ;;  %v3748_v48 = vld [vmem:[#allocation2 + $0x51] sm:$0xff] }
 0x323   : > { %4871 = vmatpush3.bf16.msra.mxu0 %v5298_v6  ;;  %4882 = vmatprep.mubr.bf16.mxu0 %v2701_v54  ;;  %v5323_v6 = vld [vmem:[%s6370_s5 + $0x158] sm:$0xff]   ;;  %v5346_v54 = vld [vmem:[%s6370_s5 + $0x210] sm:$0xff]  }
 0x324   : > { %4872 = vmatprep.subr.bf16.mxu0 %v5299_v46 }
 0x327   : > { %4873 = vmatpush3.bf16.msra.mxu0 %v5299_v46  ;;  %v5344_v46 = vld [vmem:[%s6370_s5 + $0x200] sm:$0xff]  }
 0x328   : > { %4874 = vmatprep.subr.bf16.mxu0 %v5300_v57 }
 0x32b   : > { %4875 = vmatpush3.bf16.msra.mxu0 %v5300_v57 }
 0x32c   : > { %4876 = vmatprep.subr.bf16.mxu0 %v5301_v2 }
 0x32f   : > { %4877 = vmatpush3.bf16.msra.mxu0 %v5301_v2  ;;  %v5347_v2 = vld [vmem:[%s6370_s5 + $0x218] sm:$0xff]  }
 0x330   : > { %4878 = vmatprep.subr.bf16.mxu0 %v5302_v7 }
 0x333   : > { %4879 = vmatpush3.bf16.msra.mxu0 %v5302_v7 }
 0x334   : > { %4880 = vmatprep.subr.bf16.mxu0 %v5303_v58 }
 0x337   : > { %4881 = vmatpush3.bf16.msra.mxu0 %v5303_v58 }
 0x338   : > { %4890 = vmatprep.subr.bf16.mxu0 %v5304_v12 }
 0x33a   : > { %4883 = vmatmul.mubr.bf16.vlgmr.msra.gmra.mrb[8].mxu0 %v6142_v19 }
 0x33b   : > { %4886 = vmatprep.mubr.bf16.mxu0 %v6149_v13  ;;  %4891 = vmatpush3.bf16.msra.mxu0 %v5304_v12 }
 0x33c   : > { %4892 = vmatprep.subr.bf16.mxu0 %v5305_v9 }
 0x33f   : > { %4893 = vmatpush3.bf16.msra.mxu0 %v5305_v9 }
 0x340   : > { %4894 = vmatprep.subr.bf16.mxu0 %v5306_v20 }
 0x342   : > { %4887 = vmatmul.mubr.bf16.gmra.mrb[12].mxu0 %v6160_v21 }
 0x343   : > { %4895 = vmatpush3.bf16.msra.mxu0 %v5306_v20  ;;  %4906 = vmatprep.mubr.bf16.mxu0 %v2851_v47 }
 0x344   : > { %4896 = vmatprep.subr.bf16.mxu0 %v5307_v43 }
 0x347   : > { %4897 = vmatpush3.bf16.msra.mxu0 %v5307_v43  ;;  %v5351_v43 = vld [vmem:[%s6370_s5 + $0x238] sm:$0xff]  }
 0x348   : > { %4898 = vmatprep.subr.bf16.mxu0 %v5308_v23 }
 0x34b   : > { %4899 = vmatpush3.bf16.msra.mxu0 %v5308_v23  ;;  %v3601_v23 = vld [vmem:[#allocation3 + $0x92] sm:$0xff] }
 0x34c   : > { %4900 = vmatprep.subr.bf16.mxu0 %v5309_v36 }
 0x34f   : > { %4901 = vmatpush3.bf16.msra.mxu0 %v5309_v36 }
 0x350   : > { %4902 = vmatprep.subr.bf16.mxu0 %v5310_v31 }
 0x353   : > { %4903 = vmatpush3.bf16.msra.mxu0 %v5310_v31 }
 0x354   : > { %4904 = vmatprep.subr.bf16.mxu0 %v5311_v55 }
 0x357   : > { %4905 = vmatpush3.bf16.msra.mxu0 %v5311_v55  ;;  %v4322_v55 = vld [vmem:[%s6371_s6] ss:$0 sm:$0xff] }
 0x358   : > { %4914 = vmatprep.subr.bf16.mxu0 %v5312_v3 }
 0x35a   : > { %4907 = vmatmul.mubr.bf16.vlgmr.msra.gmra.mrb[8].mxu0 %v2852_v8 }
 0x35b   : > { %4910 = vmatprep.mubr.bf16.mxu0 %v2853_v33  ;;  %4915 = vmatpush3.bf16.msra.mxu0 %v5312_v3 }
 0x35c   : > { %4916 = vmatprep.subr.bf16.mxu0 %v5313_v10 }
 0x35f   : > { %4917 = vmatpush3.bf16.msra.mxu0 %v5313_v10 }
 0x360   : > { %4918 = vmatprep.subr.bf16.mxu0 %v5314_v59 }
 0x362   : > { %4911 = vmatmul.mubr.bf16.gmra.mrb[12].mxu0 %v2854_v62 }
 0x363   : > { %4919 = vmatpush3.bf16.msra.mxu0 %v5314_v59  ;;  %4930 = vmatprep.mubr.bf16.mxu0 %v3001_v61  ;;  %v5321_v61 = vld [vmem:[%s6370_s5 + $0x148] sm:$0xff]  }
 0x364   : > { %4920 = vmatprep.subr.bf16.mxu0 %v5315_v17 }
 0x367   : > { %4921 = vmatpush3.bf16.msra.mxu0 %v5315_v17 }
 0x368   : > { %4922 = vmatprep.subr.bf16.mxu0 %v5316_v27 }
 0x36b   : > { %4923 = vmatpush3.bf16.msra.mxu0 %v5316_v27 }
 0x36c   : > { %4924 = vmatprep.subr.bf16.mxu0 %v5317_v29 }
 0x36f   : > { %4925 = vmatpush3.bf16.msra.mxu0 %v5317_v29  ;;  %v3744_v29 = vld [vmem:[#allocation2 + $0x11] sm:$0xff] }
 0x370   : > { %4926 = vmatprep.subr.bf16.mxu0 %v5318_v32 }
 0x373   : > { %4927 = vmatpush3.bf16.msra.mxu0 %v5318_v32 }
 0x374   : > { %4928 = vmatprep.subr.bf16.mxu0 %v5319_v24 }
 0x377   : > { %4929 = vmatpush3.bf16.msra.mxu0 %v5319_v24 }
 0x378   : > { %4938 = vmatprep.subr.bf16.mxu0 %v5320_v45 }
 0x37a   : > { %4931 = vmatmul.mubr.bf16.vlgmr.msra.gmra.mrb[8].mxu0 %v3002_v53  ;;  %v5326_v53 = vld [vmem:[%s6370_s5 + $0x170] sm:$0xff]  }
 0x37b   : > { %4934 = vmatprep.mubr.bf16.mxu0 %v3003_v44  ;;  %4939 = vmatpush3.bf16.msra.mxu0 %v5320_v45  ;;  %v5334_v44 = vld [vmem:[%s6370_s5 + $0x1b0] sm:$0xff]   ;;  %v3747_v45 = vld [vmem:[#allocation2 + $0x41] sm:$0xff] }
 0x37c   : > { %4940 = vmatprep.subr.bf16.mxu0 %v5321_v61 }
 0x37f   : > { %4941 = vmatpush3.bf16.msra.mxu0 %v5321_v61 }
 0x380   : > { %4942 = vmatprep.subr.bf16.mxu0 %v5322_v37 }
 0x382   : > { %4935 = vmatmul.mubr.bf16.gmra.mrb[12].mxu0 %v3004_v34  ;;  %v6266_v34 = vld [vmem:[#allocation3 + $0x82] sm:$0xff] }
 0x383   : > { %4943 = vmatpush3.bf16.msra.mxu0 %v5322_v37  ;;  %4954 = vmatprep.mubr.bf16.mxu0 %v3151_v56  ;;  %v3154_v1 = vpack.c.bf16 %v6266_v34, %v6156_v14  ;;  %v5336_v56 = vld [vmem:[%s6370_s5 + $0x1c0] sm:$0xff]   ;;  %v3605_v36 = vpack.c.bf16 %v3601_v23, %v6266_v34 }
 0x384   : > { %4944 = vmatprep.subr.bf16.mxu0 %v5323_v6 }
 0x387   : > { %4945 = vmatpush3.bf16.msra.mxu0 %v5323_v6 }
 0x388   : > { %4946 = vmatprep.subr.bf16.mxu0 %v5324_v40 }
 0x38b   : > { %4947 = vmatpush3.bf16.msra.mxu0 %v5324_v40  ;;  %v3745_v40 = vld [vmem:[#allocation2 + $0x21] sm:$0xff] }
 0x38c   : > { %4948 = vmatprep.subr.bf16.mxu0 %v5325_v42 }
 0x38f   : > { %4949 = vmatpush3.bf16.msra.mxu0 %v5325_v42 }
 0x390   : > { %4950 = vmatprep.subr.bf16.mxu0 %v5326_v53 }
 0x393   : > { %4951 = vmatpush3.bf16.msra.mxu0 %v5326_v53 }
 0x394   : > { %4952 = vmatprep.subr.bf16.mxu0 %v5327_v26 }
 0x397   : > { %4953 = vmatpush3.bf16.msra.mxu0 %v5327_v26 }
 0x398   : > { %4962 = vmatprep.subr.bf16.mxu0 %v5328_v63 }
 0x39a   : > { %4955 = vmatmul.mubr.bf16.vlgmr.msra.gmra.mrb[8].mxu0 %v3152_v4  ;;  %v5333_v4 = vld [vmem:[%s6370_s5 + $0x1a8] sm:$0xff]  }
 0x39b   : > { %4958 = vmatprep.mubr.bf16.mxu0 %v3153_v5  ;;  %4963 = vmatpush3.bf16.msra.mxu0 %v5328_v63  ;;  %v3451_v5 = vld [vmem:[#allocation3 + $0x91] sm:$0xff] }
 0x39c   : > { %4964 = vmatprep.subr.bf16.mxu0 %v5329_v22  ;;  %v3455_v57 = vpack.c.bf16 %v3451_v5, %v6045_v11  ;;  %v5349_v11 = vld [vmem:[%s6370_s5 + $0x228] sm:$0xff]  }
 0x39f   : > { %4965 = vmatpush3.bf16.msra.mxu0 %v5329_v22 }
 0x3a0   : > { %4966 = vmatprep.subr.bf16.mxu0 %v5330_v15 }
 0x3a2   : > { %4959 = vmatmul.mubr.bf16.gmra.mrb[12].mxu0 %v3154_v1 }
 0x3a3   : > { %4967 = vmatpush3.bf16.msra.mxu0 %v5330_v15  ;;  %4978 = vmatprep.mubr.bf16.mxu0 %v6076_v35  ;;  %v5335_v35 = vld [vmem:[%s6370_s5 + $0x1b8] sm:$0xff]  }
 0x3a4   : > { %4968 = vmatprep.subr.bf16.mxu0 %v5331_v30 }
 0x3a7   : > { %4969 = vmatpush3.bf16.msra.mxu0 %v5331_v30 }
 0x3a8   : > { %4970 = vmatprep.subr.bf16.mxu0 %v5332_v25 }
 0x3ab   : > { %4971 = vmatpush3.bf16.msra.mxu0 %v5332_v25 }
 0x3ac   : > { %4972 = vmatprep.subr.bf16.mxu0 %v5333_v4 }
 0x3af   : > { %4973 = vmatpush3.bf16.msra.mxu0 %v5333_v4 }
 0x3b0   : > { %4974 = vmatprep.subr.bf16.mxu0 %v5334_v44 }
 0x3b3   : > { %4975 = vmatpush3.bf16.msra.mxu0 %v5334_v44 }
 0x3b4   : > { %4976 = vmatprep.subr.bf16.mxu0 %v5335_v35 }
 0x3b7   : > { %4977 = vmatpush3.bf16.msra.mxu0 %v5335_v35  ;;  %v3750_v35 = vld [vmem:[#allocation2 + $0x71] sm:$0xff] }
 0x3b8   : > { %4986 = vmatprep.subr.bf16.mxu0 %v5336_v56 }
 0x3ba   : > { %4979 = vmatmul.mubr.bf16.vlgmr.msra.gmra.mrb[8].mxu0 %v6103_v16  ;;  %v5340_v16 = vld [vmem:[%s6370_s5 + $0x1e0] sm:$0xff]  }
 0x3bb   : > { %4982 = vmatprep.mubr.bf16.mxu0 %v6114_v52  ;;  %4987 = vmatpush3.bf16.msra.mxu0 %v5336_v56  ;;  %v5342_v52 = vld [vmem:[%s6370_s5 + $0x1f0] sm:$0xff]  }
 0x3bc   : > { %4988 = vmatprep.subr.bf16.mxu0 %v5337_v0 }
 0x3bf   : > { %4989 = vmatpush3.bf16.msra.mxu0 %v5337_v0 }
 0x3c0   : > { %4990 = vmatprep.subr.bf16.mxu0 %v5338_v41 }
 0x3c2   : > { %4983 = vmatmul.mubr.bf16.gmra.mrb[12].mxu0 %v3305_v50 }
 0x3c3   : > { %4991 = vmatpush3.bf16.msra.mxu0 %v5338_v41  ;;  %5002 = vmatprep.mubr.bf16.mxu0 %v6035_v18  ;;  %v5343_v18 = vld [vmem:[%s6370_s5 + $0x1f8] sm:$0xff]  }
 0x3c4   : > { %4992 = vmatprep.subr.bf16.mxu0 %v5339_v51 }
 0x3c7   : > { %4993 = vmatpush3.bf16.msra.mxu0 %v5339_v51 }
 0x3c8   : > { %4994 = vmatprep.subr.bf16.mxu0 %v5340_v16 }
 0x3cb   : > { %4995 = vmatpush3.bf16.msra.mxu0 %v5340_v16  ;;  %v3751_v16 = vld [vmem:[#allocation2 + $0x81] sm:$0xff] }
 0x3cc   : > { %4996 = vmatprep.subr.bf16.mxu0 %v5341_v38 }
 0x3cf   : > { %4997 = vmatpush3.bf16.msra.mxu0 %v5341_v38 }
 0x3d0   : > { %4998 = vmatprep.subr.bf16.mxu0 %v5342_v52 }
 0x3d3   : > { %4999 = vmatpush3.bf16.msra.mxu0 %v5342_v52 }
 0x3d4   : > { %5000 = vmatprep.subr.bf16.mxu0 %v5343_v18 }
 0x3d7   : > { %5001 = vmatpush3.bf16.msra.mxu0 %v5343_v18 }
 0x3d8   : > { %5010 = vmatprep.subr.bf16.mxu0 %v5344_v46 }
 0x3da   : > { %5003 = vmatmul.mubr.bf16.vlgmr.msra.gmra.mrb[8].mxu0 %v6056_v28  ;;  %v5348_v28 = vld [vmem:[%s6370_s5 + $0x220] sm:$0xff]  }
 0x3db   : > { %5006 = vmatprep.mubr.bf16.mxu0 %v6084_v39  ;;  %5011 = vmatpush3.bf16.msra.mxu0 %v5344_v46  ;;  %v3749_v46 = vld [vmem:[#allocation2 + $0x61] sm:$0xff] }
 0x3dc   : > { %5012 = vmatprep.subr.bf16.mxu0 %v5345_v49 }
 0x3df   : > { %5013 = vmatpush3.bf16.msra.mxu0 %v5345_v49 }
 0x3e0   : > { %5014 = vmatprep.subr.bf16.mxu0 %v5346_v54 }
 0x3e2   : > { %5007 = vmatmul.mubr.bf16.gmra.mrb[12].mxu0 %v3455_v57 }
 0x3e3   : > { %5015 = vmatpush3.bf16.msra.mxu0 %v5346_v54  ;;  %5026 = vmatprep.mubr.bf16.mxu0 %v6142_v19  ;;  %v5350_v19 = vld [vmem:[%s6370_s5 + $0x230] sm:$0xff]  }
 0x3e4   : > { %5016 = vmatprep.subr.bf16.mxu0 %v5347_v2 }
 0x3e5   : > { %v4836_v39 = vpop.f32.mrb[8].mxu1 }
 0x3e6   : > { %v2549_v7 = vpop.f32.mrb[9].mxu1 }
 0x3e7   : > { %5017 = vmatpush3.bf16.msra.mxu0 %v5347_v2  ;;  %v4837_v58 = vpop.f32.mrb[10].mxu1 }
 0x3e8   : > { %5018 = vmatprep.subr.bf16.mxu0 %v5348_v28  ;;  %v2552_v12 = vpop.f32.mrb[11].mxu1 }
 0x3eb   : > { %5019 = vmatpush3.bf16.msra.mxu0 %v5348_v28 }
 0x3ec   : > { %5020 = vmatprep.subr.bf16.mxu0 %v5349_v11 }
 0x3ed   : > { %v4840_v9 = vpop.f32.mrb[12].mxu1 }
 0x3ee   : > { %v2565_v20 = vpop.f32.mrb[13].mxu1 }
 0x3ef   : > { %5021 = vmatpush3.bf16.msra.mxu0 %v5349_v11  ;;  %v4841_v14 = vpop.f32.mrb[14].mxu1 }
 0x3f0   : > { %5022 = vmatprep.subr.bf16.mxu0 %v5350_v19  ;;  %v2568_v47 = vpop.f32.mrb[15].mxu1 }
 0x3f3   : > { %5023 = vmatpush3.bf16.msra.mxu0 %v5350_v19 }
 0x3f4   : > { %5024 = vmatprep.subr.bf16.mxu0 %v5351_v43 }
 0x3f7   : > { %5025 = vmatpush3.bf16.msra.mxu0 %v5351_v43 }
 0x3fa   : > { %5027 = vmatmul.mubr.bf16.vlgmr.msra.gmra.mrb[8].mxu0 %v6149_v13  ;;  %v3746_v13 = vld [vmem:[#allocation2 + $0x31] sm:$0xff] }
 0x3fb   : > { %5030 = vmatprep.mubr.bf16.mxu0 %v6160_v21 }
 0x402   : > { %5031 = vmatmul.mubr.bf16.gmra.mrb[12].mxu0 %v3605_v36 }
 0x4cd   : > { %v5028_v31 = vpop.f32.mrb[8].mxu0 }
 0x4ce   : > { %v5034_v3 = vadd.f32 %v5028_v31, %v4836_v39  ;;  %v3705_v8 = vpop.f32.mrb[9].mxu0 }
 0x4cf   : > { %v5035_v10 = vadd.f32 %v3705_v8, %v2549_v7  ;;  %v5029_v33 = vpop.f32.mrb[10].mxu0 }
 0x4d0   : > { %v3761_v59 = vadd.f32 %v5034_v3, %v4322_v55  ;;  %v5036_v60 = vadd.f32 %v5029_v33, %v4837_v58  ;;  %v3708_v62 = vpop.f32.mrb[11].mxu0 }
 0x4d1   : > { %v3759_v17 = vadd.f32 %v5035_v10, %v4322_v55  ;;  %v5037_v21 = vadd.f32 %v3708_v62, %v2552_v12 }
 0x4d2   : > { %v3769_v27 = vadd.f32 %v3761_v59, %v3746_v13  ;;  %v3762_v32 = vadd.f32 %v5036_v60, %v4322_v55 }
 0x4d3   : > { %v3767_v24 = vadd.f32 %v3759_v17, %v3744_v29  ;;  %v3760_v61 = vadd.f32 %v5037_v21, %v4322_v55 }
 0x4d4   : > { %v3777_v37 = vmax.f32 %v3769_v27, 0.0  ;;  %v3770_v6 = vadd.f32 %v3762_v32, %v3747_v45 }
 0x4d5   : > { %v3775_v42 = vmax.f32 %v3767_v24, 0.0  ;;  %v3768_v53 = vadd.f32 %v3760_v61, %v3745_v40  ;;  %v5032_v26 = vpop.f32.mrb[12].mxu0 }
 0x4d6   : > { %3785 = vst [vmem:[%s6352_s18 + $0x10] sm:$0xff] %v3777_v37  ;;  %v3778_v63 = vmax.f32 %v3770_v6, 0.0  ;;  %v5038_v22 = vadd.f32 %v5032_v26, %v4840_v9  ;;  %v3721_v15 = vpop.f32.mrb[13].mxu0 }
 0x4d7   : > { %3783 = vst [vmem:[%s6352_s18] sm:$0xff] %v3775_v42  ;;  %v3776_v34 = vmax.f32 %v3768_v53, 0.0  ;;  %v5039_v1 = vadd.f32 %v3721_v15, %v2565_v20  ;;  %v5033_v30 = vpop.f32.mrb[14].mxu0 }
 0x4d8   : > { %3786 = vst [vmem:[%s6352_s18 + $0x18] sm:$0xff] %v3778_v63  ;;  %v3765_v25 = vadd.f32 %v5038_v22, %v4322_v55  ;;  %v5040_v4 = vadd.f32 %v5033_v30, %v4841_v14  ;;  %v3724_v44 = vpop.f32.mrb[15].mxu0 }
 0x4d9   : > { %3784 = vst [vmem:[%s6352_s18 + $0x8] sm:$0xff] %v3776_v34  ;;  %v3763_v56 = vadd.f32 %v5039_v1, %v4322_v55  ;;  %v5041_v0 = vadd.f32 %v3724_v44, %v2568_v47 }
 0x4da   : > { %v3773_v41 = vadd.f32 %v3765_v25, %v3750_v35  ;;  %v3766_v50 = vadd.f32 %v5040_v4, %v4322_v55 }
 0x4db   : > { %v3771_v51 = vadd.f32 %v3763_v56, %v3748_v48  ;;  %v3764_v38 = vadd.f32 %v5041_v0, %v4322_v55 }
 0x4dc   : > { %v3781_v52 = vmax.f32 %v3773_v41, 0.0  ;;  %v3774_v18 = vadd.f32 %v3766_v50, %v3751_v16 }
 0x4dd   : > { %v3779_v49 = vmax.f32 %v3771_v51, 0.0  ;;  %v3772_v54 = vadd.f32 %v3764_v38, %v3749_v46 }
 0x4de   : > { %3789 = vst [vmem:[%s6352_s18 + $0x30] sm:$0xff] %v3781_v52  ;;  %v3782_v5 = vmax.f32 %v3774_v18, 0.0 }
 0x4df   : > { %3787 = vst [vmem:[%s6352_s18 + $0x20] sm:$0xff] %v3779_v49  ;;  %v3780_v57 = vmax.f32 %v3772_v54, 0.0 }
 0x4e0   : > { %3790 = vst [vmem:[%s6352_s18 + $0x38] sm:$0xff] %v3782_v5 }
 0x4e1   : > { %3788 = vst [vmem:[%s6352_s18 + $0x28] sm:$0xff] %v3780_v57 }
 0x4e2 PF: > { %s17_s24 = sadd.s32 1, %s5360_s24  }
 0x4e3   : > { %p14_p4 = scmp.ge.s32.totalorder %s17_s24, 4  }
 0x4e5   :  { %16 = sbr.rel (!%p14_p4) target bundleno = 1 (0x1), region = 102 }

</bundles_post_ra>
